<compile_context>
chip_gen: v7x
topology: tpu7x:2x2x1
jax: 0.10.0
libtpu: 0.0.40
codegen_flags: <defaults>
</compile_context>

<pallas_src>
import functools
import math

import jax
import jax.numpy as jnp
import numpy as np
from jax import lax
from jax.experimental import pallas as pl
from jax.experimental.pallas import tpu as pltpu


_LANE = 128


# ----------------------------- hardware-aware config --------------------------

def _vmem_capacity_bytes():
    try:
        return int(pltpu.get_tpu_info().vmem_capacity_bytes)
    except Exception:
        return 64 * 1024 * 1024        # conservative (v7x per-TC VMEM)


_VMEM_CAP = _vmem_capacity_bytes()
# ~96 MiB on 128 MiB parts (v5e/v6e), ~48 MiB on 64 MiB parts (v7x).
_VMEM_LIMIT = max(16 * 1024 * 1024,
                  min(_VMEM_CAP - 16 * 1024 * 1024, int(_VMEM_CAP * 0.75)))


def _num_tensorcores():
    """2 on v7x-like parts (so the fused-LN call can megacore-shard over M)."""
    try:
        kind = str(jax.devices()[0].device_kind).lower()
        if "v7" in kind:
            return 2
        if any(v in kind for v in ("v2", "v3", "v4", "v5", "v6")):
            return 1
    except Exception:
        pass
    return 2 if _VMEM_CAP <= 64 * 1024 * 1024 else 1


_NUM_TC = _num_tensorcores()


# ----------------------------- helpers ---------------------------------------

def _gelu(x, approx):
    if approx:
        # tanh approximation -> EUP slot (opt-in; not bit-parity with nn.GELU()).
        c = math.sqrt(2.0 / math.pi)
        return 0.5 * x * (1.0 + jnp.tanh(c * (x + 0.044715 * x * x * x)))
    # PyTorch nn.GELU() default: exact erf formulation.
    return 0.5 * x * (1.0 + lax.erf(x * (1.0 / math.sqrt(2.0))))


def _pick_tile(dim, preferred):
    """Largest multiple of 128 that divides `dim`, capped at `preferred`.
    If `dim` is not 128-aligned, use the full dim (full-extent block is OK)."""
    if dim % _LANE != 0:
        return dim
    t = min(preferred, dim)
    t -= t % _LANE
    if t < _LANE:
        t = _LANE
    while dim % t != 0:
        t -= _LANE
    return t


def _pick_tm(mp, preferred, min_blocks=1):
    """Row tile; optionally ensure >= min_blocks blocks (v7x 2-TC sharding)."""
    tm = _pick_tile(mp, preferred)
    while min_blocks > 1 and mp // tm < min_blocks and tm > _LANE:
        tm = _pick_tile(mp, tm - _LANE)
    return tm


def _compiler_params(semantics):
    return pltpu.CompilerParams(
        dimension_semantics=semantics,
        vmem_limit_bytes=_VMEM_LIMIT,
    )


def _pad_rows(x, multiple):
    m = x.shape[0]
    pad = (-m) % multiple
    if pad:
        x = jnp.pad(x, ((0, pad), (0, 0)))
    return x, m


def _plan_fused_ln(mp, k_dim, n_dim, w_itemsize, min_m_blocks):
    """Pick (tm, tk) for the fused Linear+GELU+LN kernel and decide whether the
    fused working set (incl. epilogue temporaries) fits the VMEM budget."""
    tk = _pick_tile(k_dim, 512)
    budget = max(_VMEM_LIMIT - 8 * 1024 * 1024, 8 * 1024 * 1024)
    tm = _pick_tm(mp, 512, min_m_blocks)
    while True:
        est = (2 * tm * tk * 4                # x tiles, double-buffered, f32
               + 2 * tk * n_dim * w_itemsize  # weight tiles, double-buffered
               + 2 * tm * n_dim * 4           # f32 output block (accumulator)
               + 3 * tm * n_dim * 4           # epilogue temporaries (y, centered, ...)
               + 6 * n_dim * 4)               # bias / gamma / beta
        if est <= budget:
            return tm, tk, True
        if tm <= _LANE:
            return tm, tk, False
        tm = _pick_tile(mp, tm - _LANE)


# ----------------------------- kernels ----------------------------------------

def linear_gelu_kernel(x_ref, w_ref, b_ref, o_ref, *, apply_gelu, approx_gelu):
    """Tiled y = gelu(x @ W + b). Grid = (M/tm, N/tn, K/tk), K innermost.
    Accumulates directly into the K-resident f32 output block (no scratch)."""
    k = pl.program_id(2)

    @pl.when(k == 0)
    def _():
        o_ref[...] = jnp.zeros_like(o_ref)

    # bf16 (or f32) MXU inputs, f32 accumulation.
    o_ref[...] += jnp.dot(
        x_ref[...].astype(w_ref.dtype), w_ref[...],
        preferred_element_type=jnp.float32,
    )

    @pl.when(k == pl.num_programs(2) - 1)
    def _():
        y = o_ref[...] + b_ref[...]            # bias block (1, tn) broadcasts
        if apply_gelu:
            y = _gelu(y, approx_gelu)
        o_ref[...] = y


def linear_gelu_ln_kernel(x_ref, w_ref, b_ref, g_ref, bb_ref, o_ref, *,
                          apply_gelu, approx_gelu, eps):
    """Final layer: y = LayerNorm(gelu(x @ W + b)).
    Output tile covers the full feature axis (tn == N). Grid = (M/tm, K/tk)."""
    k = pl.program_id(1)

    @pl.when(k == 0)
    def _():
        o_ref[...] = jnp.zeros_like(o_ref)

    o_ref[...] += jnp.dot(
        x_ref[...].astype(w_ref.dtype), w_ref[...],
        preferred_element_type=jnp.float32,
    )

    @pl.when(k == pl.num_programs(1) - 1)
    def _():
        y = o_ref[...] + b_ref[...]
        if apply_gelu:
            y = _gelu(y, approx_gelu)
        mean = jnp.mean(y, axis=-1, keepdims=True)
        centered = y - mean
        var = jnp.mean(centered * centered, axis=-1, keepdims=True)
        o_ref[...] = (centered * lax.rsqrt(var + eps)) * g_ref[...] + bb_ref[...]


def layernorm_kernel(x_ref, g_ref, b_ref, o_ref, *, eps):
    x = x_ref[...].astype(jnp.float32)
    mean = jnp.mean(x, axis=-1, keepdims=True)
    centered = x - mean
    var = jnp.mean(centered * centered, axis=-1, keepdims=True)
    y = centered * lax.rsqrt(var + eps)
    o_ref[...] = (y * g_ref[...] + b_ref[...]).astype(o_ref.dtype)


# ----------------------------- wrappers ----------------------------------------

def linear_gelu(x, w_io, b, *, apply_gelu=True, approx_gelu=False,
                tm=None, tn=None, tk=None):
    """x: (M, K) f32 with M % 128 == 0; w_io: (K, N) pre-transposed; b: (N,)."""
    M, K = x.shape
    K2, N = w_io.shape
    assert K == K2 and M % _LANE == 0

    tm = tm or _pick_tile(M, 512)
    tk = tk or _pick_tile(K, 512)
    tn = tn or _pick_tile(N, 512)

    b2 = b.reshape(1, N).astype(jnp.float32)
    kernel = functools.partial(linear_gelu_kernel, apply_gelu=apply_gelu,
                               approx_gelu=approx_gelu)
    return pl.pallas_call(
        kernel,
        out_shape=jax.ShapeDtypeStruct((M, N), jnp.float32),
        grid_spec=pltpu.PrefetchScalarGridSpec(
            num_scalar_prefetch=0,
            grid=(M // tm, N // tn, K // tk),
            in_specs=[
                pl.BlockSpec((tm, tk), lambda i, j, k: (i, k)),
                pl.BlockSpec((tk, tn), lambda i, j, k: (k, j)),
                pl.BlockSpec((1, tn), lambda i, j, k: (0, j)),
            ],
            out_specs=pl.BlockSpec((tm, tn), lambda i, j, k: (i, j)),
        ),
        compiler_params=_compiler_params(("parallel", "parallel", "arbitrary")),
    )(x, w_io, b2)


def linear_gelu_layernorm(x, w_io, b, gamma, beta, *, apply_gelu=True,
                          approx_gelu=False, eps=1e-5, tm=None, tk=None):
    """Fused final layer: LayerNorm(gelu(x @ W + b)). tn == N == target_dim."""
    M, K = x.shape
    K2, N = w_io.shape
    assert K == K2 and M % _LANE == 0

    tm = tm or _pick_tm(M, 512, _NUM_TC)
    tk = tk or _pick_tile(K, 512)

    b2 = b.reshape(1, N).astype(jnp.float32)
    g2 = gamma.reshape(1, N).astype(jnp.float32)
    be2 = beta.reshape(1, N).astype(jnp.float32)
    kernel = functools.partial(linear_gelu_ln_kernel, apply_gelu=apply_gelu,
                               approx_gelu=approx_gelu, eps=eps)
    return pl.pallas_call(
        kernel,
        out_shape=jax.ShapeDtypeStruct((M, N), jnp.float32),
        grid_spec=pltpu.PrefetchScalarGridSpec(
            num_scalar_prefetch=0,
            grid=(M // tm, K // tk),
            in_specs=[
                pl.BlockSpec((tm, tk), lambda i, k: (i, k)),
                pl.BlockSpec((tk, N), lambda i, k: (k, 0)),
                pl.BlockSpec((1, N), lambda i, k: (0, 0)),
                pl.BlockSpec((1, N), lambda i, k: (0, 0)),
                pl.BlockSpec((1, N), lambda i, k: (0, 0)),
            ],
            out_specs=pl.BlockSpec((tm, N), lambda i, k: (i, 0)),
        ),
        compiler_params=_compiler_params(("parallel", "arbitrary")),
    )(x, w_io, b2, g2, be2)


def layer_norm(x, gamma, beta, *, eps=1e-5, tm=None):
    """Standalone LayerNorm fallback (used only when fusion would not fit)."""
    M, D = x.shape
    assert M % _LANE == 0
    if tm is None:
        # memory-bound: big row tiles budgeted against the real VMEM limit
        bytes_per_row = 16 * D                 # 2x input + 2x output buffers, f32
        budget_rows = max(_LANE, (_VMEM_LIMIT // 2) // bytes_per_row)
        tm = _pick_tile(M, min(1024, budget_rows))
    kernel = functools.partial(layernorm_kernel, eps=eps)
    return pl.pallas_call(
        kernel,
        out_shape=jax.ShapeDtypeStruct((M, D), x.dtype),
        grid_spec=pltpu.PrefetchScalarGridSpec(
            num_scalar_prefetch=0,
            grid=(M // tm,),
            in_specs=[
                pl.BlockSpec((tm, D), lambda i: (i, 0)),
                pl.BlockSpec((1, D), lambda i: (0, 0)),
                pl.BlockSpec((1, D), lambda i: (0, 0)),
            ],
            out_specs=pl.BlockSpec((tm, D), lambda i: (i, 0)),
        ),
        compiler_params=_compiler_params(("parallel",)),
    )(x, gamma.reshape(1, D).astype(jnp.float32),
      beta.reshape(1, D).astype(jnp.float32))


# ----------------------------- ClipProjector -----------------------------------

def init_clip_projector_params(key, clip_dim, target_dim, hidden_dims,
                               weight_dtype=jnp.bfloat16):
    """Synthetic init mirroring nn.Linear defaults.  Weights stored
    PRE-TRANSPOSED as (in, out) so the forward path never materializes
    transposed copies in HBM.  weight_dtype=jnp.bfloat16 is the fast MXU path
    (f32 accumulation); weight_dtype=jnp.float32 gives exact torch parity."""
    dims = [clip_dim] + list(hidden_dims) + [target_dim]
    params = {"linears": []}
    for d_in, d_out in zip(dims[:-1], dims[1:]):
        key, kw, kb = jax.random.split(key, 3)
        bound = 1.0 / math.sqrt(d_in)
        w = jax.random.uniform(kw, (d_in, d_out), jnp.float32, -bound, bound)
        b = jax.random.uniform(kb, (d_out,), jnp.float32, -bound, bound)
        params["linears"].append((w.astype(weight_dtype), b))
    # nn.LayerNorm default init: weight=1, bias=0.
    params["ln_gamma"] = jnp.ones((target_dim,), jnp.float32)
    params["ln_beta"] = jnp.zeros((target_dim,), jnp.float32)
    return params


def clip_projector_forward(params, x, *, approx_gelu=False):
    """x: (..., clip_dim) -> (..., target_dim). Hot path runs in Pallas."""
    lead = x.shape[:-1]
    M = int(np.prod(lead)) if lead else 1
    h = x.reshape(M, x.shape[-1]).astype(jnp.float32)
    h, m_orig = _pad_rows(h, _LANE)           # padded rows are sliced off below
    Mp = h.shape[0]

    linears = params["linears"]
    gamma, beta = params["ln_gamma"], params["ln_beta"]
    n_layers = len(linears)

    # Fuse LayerNorm into the last linear's epilogue when the fused working set
    # (double-buffered x/w tiles, K-resident f32 output block and the epilogue
    # temporaries) fits the generation-aware VMEM budget; otherwise shrink tm
    # and, failing that, fall back to a standalone LN pass.
    w_last, _ = linears[-1]
    k_last, n_last = w_last.shape
    tm_last, tk_last, fuse_ln = _plan_fused_ln(
        Mp, k_last, n_last, jnp.dtype(w_last.dtype).itemsize, _NUM_TC)

    for idx, (w, b) in enumerate(linears):
        if idx == n_layers - 1 and fuse_ln:
            h = linear_gelu_layernorm(h, w, b, gamma, beta, apply_gelu=True,
                                      approx_gelu=approx_gelu,
                                      tm=tm_last, tk=tk_last)
        else:
            h = linear_gelu(h, w, b, apply_gelu=True, approx_gelu=approx_gelu)
    if not fuse_ln:
        h = layer_norm(h, gamma, beta)

    h = h[:m_orig]
    return h.reshape(*lead, h.shape[-1]).astype(x.dtype)


# ----------------------------- reference (pure JAX) -----------------------------

def clip_projector_ref(params, x):
    """f32 reference.  For bf16-weight params it models the MXU path
    (bf16-rounded matmul inputs, f32 accumulation / GELU / LN)."""
    h = x.astype(jnp.float32)
    for (w, b) in params["linears"]:
        hw = h.astype(w.dtype).astype(jnp.float32)
        h = jnp.dot(hw, w.astype(jnp.float32)) + b.astype(jnp.float32)
        h = 0.5 * h * (1.0 + lax.erf(h / math.sqrt(2.0)))
    mean = jnp.mean(h, axis=-1, keepdims=True)
    var = jnp.mean((h - mean) ** 2, axis=-1, keepdims=True)
    h = (h - mean) * lax.rsqrt(var + 1e-5)
    return h * params["ln_gamma"] + params["ln_beta"]


# ----------------------------- main ---------------------------------------------

if __name__ == "__main__":
    # Small shapes consistent with the module structure (scaled-down dims,
    # same Linear->GELU x4 + LayerNorm topology as the 1024->2048->4096->4096
    # ->target_dim original).
    batch, seq = 2, 64          # M = 128
    clip_dim = 256
    hidden_dims = (512, 1024, 1024)
    target_dim = 256

    key = jax.random.PRNGKey(0)
    key, kx = jax.random.split(key)
    x = jax.random.normal(kx, (batch, seq, clip_dim), jnp.float32)

    # 1) Exact-parity path (f32 weights): matches the torch module numerics.
    params_f32 = init_clip_projector_params(
        key, clip_dim, target_dim, hidden_dims, weight_dtype=jnp.float32)
    out = jax.block_until_ready(clip_projector_forward(params_f32, x))
    ref = clip_projector_ref(params_f32, x)
    np.testing.assert_allclose(np.asarray(out), np.asarray(ref),
                               rtol=2e-4, atol=2e-4)
    assert out.shape == (batch, seq, target_dim)

    # 2) Fast path (bf16 weights on the MXU, f32 accumulation / GELU / LN).
    params_bf16 = init_clip_projector_params(
        key, clip_dim, target_dim, hidden_dims, weight_dtype=jnp.bfloat16)
    out_bf = jax.block_until_ready(clip_projector_forward(params_bf16, x))
    ref_bf = clip_projector_ref(params_bf16, x)
    np.testing.assert_allclose(np.asarray(out_bf), np.asarray(ref_bf),
                               rtol=2e-2, atol=2e-2)

    print("KERNEL_OK")
</pallas_src>

<mosaic_0001>
module attributes {stable_mosaic.version = 11 : i64} {
  func.func @linear_gelu_kernel(%arg0: i32, %arg1: i32, %arg2: i32, %arg3: memref<128x256xf32, #tpu.memory_space<vmem>>, %arg4: memref<256x512xf32, #tpu.memory_space<vmem>>, %arg5: memref<1x512xf32, #tpu.memory_space<vmem>>, %arg6: memref<128x512xf32, #tpu.memory_space<vmem>>) attributes {dimension_semantics = [#tpu.dimension_semantics<parallel>, #tpu.dimension_semantics<parallel>, #tpu.dimension_semantics<arbitrary>], iteration_bounds = array<i64: 1, 1, 1>, scalar_prefetch = 0 : i64, scratch_operands = 0 : i64, tpu.core_type = #tpu.core_type<tc>, window_params = [{transform_indices = @transform_0, window_bounds = array<i64: 128, 256>}, {transform_indices = @transform_1, window_bounds = array<i64: 256, 512>}, {transform_indices = @transform_2, window_bounds = array<i64: 1, 512>}, {transform_indices = @transform_3, window_bounds = array<i64: 128, 512>}]} {
    %c0_i32 = arith.constant 0 : i32
    %0 = arith.cmpi eq, %arg2, %c0_i32 : i32
    %1 = arith.extui %0 : i1 to i32
    %c0_i32_0 = arith.constant 0 : i32
    %2 = arith.cmpi ne, %1, %c0_i32_0 : i32
    scf.if %2 {
      %cst_10 = arith.constant 0.000000e+00 : f32
      %12 = vector.broadcast %cst_10 : f32 to vector<128x512xf32>
      %c0_11 = arith.constant 0 : index
      %c0_12 = arith.constant 0 : index
      %13 = vector.load %arg6[%c0_11, %c0_12] : memref<128x512xf32, #tpu.memory_space<vmem>>, vector<128x512xf32>
      tpu.vector_store %arg6[%c0_11, %c0_12], %12 {strides = array<i32>} : memref<128x512xf32, #tpu.memory_space<vmem>>, vector<128x512xf32>,
    } else {
    }
    %c0 = arith.constant 0 : index
    %c0_1 = arith.constant 0 : index
    %3 = vector.load %arg6[%c0, %c0_1] : memref<128x512xf32, #tpu.memory_space<vmem>>, vector<128x512xf32>
    %c0_2 = arith.constant 0 : index
    %c0_3 = arith.constant 0 : index
    %4 = vector.load %arg3[%c0_2, %c0_3] : memref<128x256xf32, #tpu.memory_space<vmem>>, vector<128x256xf32>
    %c0_4 = arith.constant 0 : index
    %c0_5 = arith.constant 0 : index
    %5 = vector.load %arg4[%c0_4, %c0_5] : memref<256x512xf32, #tpu.memory_space<vmem>>, vector<256x512xf32>
    %cst = arith.constant dense<0.000000e+00> : vector<128x512xf32>
    %6 = tpu.matmul %4, %5, %cst {dimension_numbers = #tpu.dot_dimension_numbers<[1], [0], [0], [1], [0, 0, 1, 1], [], []>} : vector<128x256xf32>, vector<256x512xf32>, vector<128x512xf32> -> vector<128x512xf32>
    %7 = arith.addf %3, %6 : vector<128x512xf32>
    %c0_6 = arith.constant 0 : index
    %c0_7 = arith.constant 0 : index
    %8 = vector.load %arg6[%c0_6, %c0_7] : memref<128x512xf32, #tpu.memory_space<vmem>>, vector<128x512xf32>
    tpu.vector_store %arg6[%c0_6, %c0_7], %7 {strides = array<i32>} : memref<128x512xf32, #tpu.memory_space<vmem>>, vector<128x512xf32>,
    %c0_i32_8 = arith.constant 0 : i32
    %9 = arith.cmpi eq, %arg2, %c0_i32_8 : i32
    %10 = arith.extui %9 : i1 to i32
    %c0_i32_9 = arith.constant 0 : i32
    %11 = arith.cmpi ne, %10, %c0_i32_9 : i32
    scf.if %11 {
      %c0_10 = arith.constant 0 : index
      %c0_11 = arith.constant 0 : index
      %12 = vector.load %arg6[%c0_10, %c0_11] : memref<128x512xf32, #tpu.memory_space<vmem>>, vector<128x512xf32>
      %c0_12 = arith.constant 0 : index
      %c0_13 = arith.constant 0 : index
      %13 = vector.load %arg5[%c0_12, %c0_13] : memref<1x512xf32, #tpu.memory_space<vmem>>, vector<1x512xf32>
      %14 = vector.broadcast %13 : vector<1x512xf32> to vector<128x512xf32>
      %15 = arith.addf %12, %14 : vector<128x512xf32>
      %cst_14 = arith.constant 5.000000e-01 : f32
      %16 = vector.broadcast %cst_14 : f32 to vector<128x512xf32>
      %17 = arith.mulf %16, %15 : vector<128x512xf32>
      %cst_15 = arith.constant 0.707106769 : f32
      %18 = vector.broadcast %cst_15 : f32 to vector<128x512xf32>
      %19 = arith.mulf %15, %18 : vector<128x512xf32>
      %20 = math.erf %19 : vector<128x512xf32>
      %cst_16 = arith.constant 1.000000e+00 : f32
      %21 = vector.broadcast %cst_16 : f32 to vector<128x512xf32>
      %22 = arith.addf %21, %20 : vector<128x512xf32>
      %23 = arith.mulf %17, %22 : vector<128x512xf32>
      %c0_17 = arith.constant 0 : index
      %c0_18 = arith.constant 0 : index
      %24 = vector.load %arg6[%c0_17, %c0_18] : memref<128x512xf32, #tpu.memory_space<vmem>>, vector<128x512xf32>
      tpu.vector_store %arg6[%c0_17, %c0_18], %23 {strides = array<i32>} : memref<128x512xf32, #tpu.memory_space<vmem>>, vector<128x512xf32>,
    } else {
    }
    return
  }
  func.func @transform_0(%arg0: i32, %arg1: i32, %arg2: i32) -> (i32, i32) {
    %c0_i32 = arith.constant 0 : i32
    return %arg0, %arg2 : i32, i32
  }
  func.func @transform_1(%arg0: i32, %arg1: i32, %arg2: i32) -> (i32, i32) {
    %c0_i32 = arith.constant 0 : i32
    return %arg2, %arg1 : i32, i32
  }
  func.func @transform_2(%arg0: i32, %arg1: i32, %arg2: i32) -> (i32, i32) {
    %c0_i32 = arith.constant 0 : i32
    %c0_i32_0 = arith.constant 0 : i32
    return %c0_i32, %arg1 : i32, i32
  }
  func.func @transform_3(%arg0: i32, %arg1: i32, %arg2: i32) -> (i32, i32) {
    %c0_i32 = arith.constant 0 : i32
    return %arg0, %arg1 : i32, i32
  }
}

</mosaic_0001>

<bundles_post_ra>
// kernel: tpu_custom_call.1
= control target key start
LH: loop header
LB: loop body
LE: loop exit
PB: predicated region body
PF: predicated region fallthrough
CT: control target
= control target key end

     0   :  { %8 = vsyncpa [#allocation3], 0  ;;  %s2082_s0 = inlined_call_operand.hbm [shape: f32[128,256], index: 0, kind: input, shape index: {}]   ;;  %s2083_s1 = inlined_call_operand.hbm [shape: f32[256,512], index: 1, kind: input, shape index: {}]   ;;  %s2084_s2 = inlined_call_operand.vmem [shape: f32[1,512], index: 2, kind: input, shape index: {}]   ;;  %s2085_s3 = inlined_call_operand.hbm [shape: f32[128,512], index: 3, kind: output, shape index: {}]  }
   0x1   :  { %9 = vsyncpa [#allocation6], 0 }
   0x2   :  { %10 = vsyncpa [#allocation4], 0  ;;  %s1676_s12 = smov [#allocation2]   ;;  %s1604_s16 = scalar_lea.hbm %s2082_s0, 4096 }
   0x3   :  { %s16_s13 = sshll.u32 %s1676_s12, 4  ;;  %p1605_p0 = scmp.ne.s32.totalorder %s2082_s0, %s1604_s16  ;;  %s17_s13 = int_to_ptr.vmem [resolvable:$true] %s16_s13 }
   0x4   :  { %p1608_p1 = scmp.lt.u32.totalorder %s1604_s16, %s2082_s0 }
   0x6   :  { %p1610_p2 = pnand %p1608_p1, %p1605_p0 }
   0x8   :  { %1613 = shalt.err (!%p1610_p2)
}
   0x9   :  { %s1614_s21 = scalar_lea.vmem %s17_s13, 4096  ;;  %p1619_p4 = scmp.lt.s32.totalorder %s17_s13, %s17_s13 }
   0xa   :  { %p1615_p3 = scmp.ne.s32.totalorder %s17_s13, %s1614_s21  ;;  %p1620_p5 = scmp.lt.s32.totalorder %s1614_s21, %s1614_s21 }
   0xc   :  { %p1621_p6 = por %p1620_p5, %p1619_p4 }
   0xe   :  { %p1622_p7 = pnand %p1621_p6, %p1615_p3 }
  0x10   :  { %1625 = shalt.err (!%p1622_p7)
}
  0x11   :  { %s1677_s22 = smov 256   ;;  %s1678_s23 = smov 16  }
  0x12   :  { %22 = dma.hbm_to_vmem [thread:$0]  %s2082_s0, 4096, %s17_s13, [#allocation3], %s1677_s22, %s1677_s22, %s1678_s23  }
  0x13   :  { %s1679_s26 = smov [#allocation5]   ;;  %s1626_s30 = scalar_lea.hbm %s2083_s1, 16384 }
  0x14   :  { %s28_s27 = sshll.u32 %s1679_s26, 4  ;;  %p1627_p8 = scmp.ne.s32.totalorder %s2083_s1, %s1626_s30  ;;  %s29_s27 = int_to_ptr.vmem [resolvable:$true] %s28_s27 }
  0x15   :  { %p1630_p9 = scmp.lt.u32.totalorder %s1626_s30, %s2083_s1 }
  0x17   :  { %p1632_p10 = pnand %p1630_p9, %p1627_p8 }
  0x19   :  { %1635 = shalt.err (!%p1632_p10)
}
  0x1a   :  { %s1636_s8 = scalar_lea.vmem %s29_s27, 16384  ;;  %p1641_p12 = scmp.lt.s32.totalorder %s29_s27, %s29_s27 }
  0x1b   :  { %p1637_p11 = scmp.ne.s32.totalorder %s29_s27, %s1636_s8  ;;  %p1642_p13 = scmp.lt.s32.totalorder %s1636_s8, %s1636_s8 }
  0x1d   :  { %p1643_p0 = por %p1642_p13, %p1641_p12 }
  0x1f   :  { %p1644_p1 = pnand %p1643_p0, %p1637_p11 }
  0x21   :  { %1647 = shalt.err (!%p1644_p1)
}
  0x22   :  { %s1680_s0 = smov 512   ;;  %s1681_s9 = smov 32  }
  0x23   :  { %34 = dma.hbm_to_vmem [thread:$0]  %s2083_s1, 16384, %s29_s27, [#allocation6], %s1680_s0, %s1680_s0, %s1681_s9  }
  0x24   :  { %1670 = dma.done.wait [#allocation3], 4096  }
  0x25   :  { %1671 = vsyncadd [#allocation3], 4294963200 }
  0x26   :  { %1672 = dma.done.wait [#allocation6], 16384  }
  0x27   :  { %1673 = vsyncadd [#allocation6], 4294950912  ;;  %v208_v0 = vld [vmem:[#allocation5 + $0x8] sm:$0xff]  ;;  %v210_v2 = vld [vmem:[#allocation5 + $0x18] sm:$0xff] }
  0x28   :  { %v212_v1 = vld [vmem:[#allocation5 + $0x28] sm:$0xff]  ;;  %v214_v4 = vld [vmem:[#allocation5 + $0x38] sm:$0xff]  ;;  %v207_v5 = vld [vmem:[#allocation5] sm:$0xff] }
  0x29   :  { %v1340_v3 = vpack.c.bf16 %v212_v1, %v208_v0  ;;  %v211_v6 = vld [vmem:[#allocation5 + $0x20] sm:$0xff]  ;;  %v1404_v7 = vpack.c.bf16 %v214_v4, %v210_v2  ;;  %v209_v9 = vld [vmem:[#allocation5 + $0x10] sm:$0xff]  ;;  %v216_v11 = vld [vmem:[#allocation5 + $0x48] sm:$0xff] }
  0x2a   :  { %v1342_v8 = vpack.c.bf16 %v211_v6, %v207_v5  ;;  %v213_v10 = vld [vmem:[#allocation5 + $0x30] sm:$0xff]  ;;  %v220_v13 = vld [vmem:[#allocation5 + $0x68] sm:$0xff]  ;;  %v218_v14 = vld [vmem:[#allocation5 + $0x58] sm:$0xff] }
  0x2b   :  { %1341 = vmatprep.subr.bf16.mxu0 %v1340_v3  ;;  %v1406_v12 = vpack.c.bf16 %v213_v10, %v209_v9  ;;  %v222_v15 = vld [vmem:[#allocation5 + $0x78] sm:$0xff]  ;;  %1405 = vmatprep.subr.bf16.mxu1 %v1404_v7  ;;  %v1344_v16 = vpack.c.bf16 %v220_v13, %v216_v11  ;;  %v215_v18 = vld [vmem:[#allocation5 + $0x40] sm:$0xff]  ;;  %v217_v20 = vld [vmem:[#allocation5 + $0x50] sm:$0xff] }
  0x2c   :  { %1343 = vmatpush1.bf16.msra.mxu0 %v1342_v8  ;;  %v1408_v17 = vpack.c.bf16 %v222_v15, %v218_v14  ;;  %v219_v19 = vld [vmem:[#allocation5 + $0x60] sm:$0xff]  ;;  %v221_v22 = vld [vmem:[#allocation5 + $0x70] sm:$0xff]  ;;  %v224_v23 = vld [vmem:[#allocation5 + $0x88] sm:$0xff] }
  0x2d   :  { %1407 = vmatpush1.bf16.msra.mxu1 %v1406_v12  ;;  %v1346_v21 = vpack.c.bf16 %v219_v19, %v215_v18  ;;  %v228_v24 = vld [vmem:[#allocation5 + $0xa8] sm:$0xff]  ;;  %1345 = vmatprep.subr.bf16.mxu0 %v1344_v16  ;;  %v1410_v25 = vpack.c.bf16 %v221_v22, %v217_v20  ;;  %v226_v27 = vld [vmem:[#allocation5 + $0x98] sm:$0xff]  ;;  %v223_v29 = vld [vmem:[#allocation5 + $0x80] sm:$0xff] }
  0x2e   :  { %1409 = vmatprep.subr.bf16.mxu1 %v1408_v17  ;;  %v1348_v26 = vpack.c.bf16 %v228_v24, %v224_v23  ;;  %v230_v28 = vld [vmem:[#allocation5 + $0xb8] sm:$0xff]  ;;  %v227_v31 = vld [vmem:[#allocation5 + $0xa0] sm:$0xff]  ;;  %v225_v32 = vld [vmem:[#allocation5 + $0x90] sm:$0xff] }
  0x2f   :  { %v1412_v30 = vpack.c.bf16 %v230_v28, %v226_v27  ;;  %v229_v33 = vld [vmem:[#allocation5 + $0xb0] sm:$0xff]  ;;  %v1350_v34 = vpack.c.bf16 %v227_v31, %v223_v29  ;;  %v232_v35 = vld [vmem:[#allocation5 + $0xc8] sm:$0xff]  ;;  %v234_v37 = vld [vmem:[#allocation5 + $0xd8] sm:$0xff] }
  0x30   :  { %1347 = vmatpush1.bf16.msra.mxu0 %v1346_v21  ;;  %v236_v36 = vld [vmem:[#allocation5 + $0xe8] sm:$0xff]  ;;  %v1414_v38 = vpack.c.bf16 %v229_v33, %v225_v32  ;;  %v238_v40 = vld [vmem:[#allocation5 + $0xf8] sm:$0xff]  ;;  %v231_v41 = vld [vmem:[#allocation5 + $0xc0] sm:$0xff] }
  0x31   :  { %1411 = vmatpush1.bf16.msra.mxu1 %v1410_v25  ;;  %1349 = vmatprep.subr.bf16.mxu0 %v1348_v26  ;;  %v1352_v39 = vpack.c.bf16 %v236_v36, %v232_v35  ;;  %v235_v42 = vld [vmem:[#allocation5 + $0xe0] sm:$0xff]  ;;  %v1416_v43 = vpack.c.bf16 %v238_v40, %v234_v37  ;;  %v233_v44 = vld [vmem:[#allocation5 + $0xd0] sm:$0xff]  ;;  %v240_v46 = vld [vmem:[#allocation5 + $0x108] sm:$0xff] }
  0x32   :  { %1413 = vmatprep.subr.bf16.mxu1 %v1412_v30  ;;  %v237_v45 = vld [vmem:[#allocation5 + $0xf0] sm:$0xff]  ;;  %v244_v47 = vld [vmem:[#allocation5 + $0x128] sm:$0xff]  ;;  %v242_v48 = vld [vmem:[#allocation5 + $0x118] sm:$0xff]  ;;  %v1354_v50 = vpack.c.bf16 %v235_v42, %v231_v41 }
  0x33   :  { %v246_v49 = vld [vmem:[#allocation5 + $0x138] sm:$0xff]  ;;  %v1418_v51 = vpack.c.bf16 %v237_v45, %v233_v44  ;;  %v1356_v52 = vpack.c.bf16 %v244_v47, %v240_v46  ;;  %v239_v53 = vld [vmem:[#allocation5 + $0x100] sm:$0xff]  ;;  %v241_v55 = vld [vmem:[#allocation5 + $0x110] sm:$0xff] }
  0x34   :  { %1351 = vmatpush1.bf16.msra.mxu0 %v1350_v34  ;;  %v243_v54 = vld [vmem:[#allocation5 + $0x120] sm:$0xff]  ;;  %v1420_v56 = vpack.c.bf16 %v246_v49, %v242_v48  ;;  %v245_v57 = vld [vmem:[#allocation5 + $0x130] sm:$0xff]  ;;  %v248_v58 = vld [vmem:[#allocation5 + $0x148] sm:$0xff] }
  0x35   :  { %1415 = vmatpush1.bf16.msra.mxu1 %v1414_v38  ;;  %1353 = vmatprep.subr.bf16.mxu0 %v1352_v39  ;;  %v252_v59 = vld [vmem:[#allocation5 + $0x168] sm:$0xff]  ;;  %v250_v60 = vld [vmem:[#allocation5 + $0x158] sm:$0xff]  ;;  %v1358_v62 = vpack.c.bf16 %v243_v54, %v239_v53  ;;  %v1422_v63 = vpack.c.bf16 %v245_v57, %v241_v55  ;;  %v247_v1 = vld [vmem:[#allocation5 + $0x140] sm:$0xff] }
  0x36   :  { %1417 = vmatprep.subr.bf16.mxu1 %v1416_v43  ;;  %v254_v61 = vld [vmem:[#allocation5 + $0x178] sm:$0xff]  ;;  %v1360_v0 = vpack.c.bf16 %v252_v59, %v248_v58  ;;  %v251_v2 = vld [vmem:[#allocation5 + $0x160] sm:$0xff]  ;;  %v249_v3 = vld [vmem:[#allocation5 + $0x150] sm:$0xff] }
  0x37   :  { %v1424_v4 = vpack.c.bf16 %v254_v61, %v250_v60  ;;  %v253_v5 = vld [vmem:[#allocation5 + $0x170] sm:$0xff]  ;;  %v256_v6 = vld [vmem:[#allocation5 + $0x188] sm:$0xff]  ;;  %v258_v8 = vld [vmem:[#allocation5 + $0x198] sm:$0xff]  ;;  %v1362_v10 = vpack.c.bf16 %v251_v2, %v247_v1 }
  0x38   :  { %1355 = vmatpush1.bf16.msra.mxu0 %v1354_v50  ;;  %v260_v7 = vld [vmem:[#allocation5 + $0x1a8] sm:$0xff]  ;;  %v262_v9 = vld [vmem:[#allocation5 + $0x1b8] sm:$0xff]  ;;  %v1426_v11 = vpack.c.bf16 %v253_v5, %v249_v3  ;;  %v255_v13 = vld [vmem:[#allocation5 + $0x180] sm:$0xff] }
  0x39   :  { %1419 = vmatpush1.bf16.msra.mxu1 %v1418_v51  ;;  %1357 = vmatprep.subr.bf16.mxu0 %v1356_v52  ;;  %v1364_v12 = vpack.c.bf16 %v260_v7, %v256_v6  ;;  %v259_v14 = vld [vmem:[#allocation5 + $0x1a0] sm:$0xff]  ;;  %v257_v15 = vld [vmem:[#allocation5 + $0x190] sm:$0xff]  ;;  %v1428_v16 = vpack.c.bf16 %v262_v9, %v258_v8  ;;  %v264_v18 = vld [vmem:[#allocation5 + $0x1c8] sm:$0xff] }
  0x3a   :  { %1421 = vmatprep.subr.bf16.mxu1 %v1420_v56  ;;  %v261_v17 = vld [vmem:[#allocation5 + $0x1b0] sm:$0xff]  ;;  %v268_v19 = vld [vmem:[#allocation5 + $0x1e8] sm:$0xff]  ;;  %v266_v20 = vld [vmem:[#allocation5 + $0x1d8] sm:$0xff]  ;;  %v1366_v22 = vpack.c.bf16 %v259_v14, %v255_v13 }
  0x3b   :  { %v270_v21 = vld [vmem:[#allocation5 + $0x1f8] sm:$0xff]  ;;  %v1430_v23 = vpack.c.bf16 %v261_v17, %v257_v15  ;;  %v1368_v24 = vpack.c.bf16 %v268_v19, %v264_v18  ;;  %v263_v25 = vld [vmem:[#allocation5 + $0x1c0] sm:$0xff]  ;;  %v265_v27 = vld [vmem:[#allocation5 + $0x1d0] sm:$0xff] }
  0x3c   :  { %1359 = vmatpush1.bf16.msra.mxu0 %v1358_v62  ;;  %v267_v26 = vld [vmem:[#allocation5 + $0x1e0] sm:$0xff]  ;;  %v1432_v28 = vpack.c.bf16 %v270_v21, %v266_v20  ;;  %v269_v29 = vld [vmem:[#allocation5 + $0x1f0] sm:$0xff]  ;;  %v272_v30 = vld [vmem:[#allocation5 + $0x208] sm:$0xff] }
  0x3d   :  { %1423 = vmatpush1.bf16.msra.mxu1 %v1422_v63  ;;  %1361 = vmatprep.subr.bf16.mxu0 %v1360_v0  ;;  %v276_v31 = vld [vmem:[#allocation5 + $0x228] sm:$0xff]  ;;  %v274_v32 = vld [vmem:[#allocation5 + $0x218] sm:$0xff]  ;;  %v1370_v34 = vpack.c.bf16 %v267_v26, %v263_v25  ;;  %v1434_v35 = vpack.c.bf16 %v269_v29, %v265_v27  ;;  %v271_v37 = vld [vmem:[#allocation5 + $0x200] sm:$0xff] }
  0x3e   :  { %1425 = vmatprep.subr.bf16.mxu1 %v1424_v4  ;;  %v278_v33 = vld [vmem:[#allocation5 + $0x238] sm:$0xff]  ;;  %v1372_v36 = vpack.c.bf16 %v276_v31, %v272_v30  ;;  %v275_v38 = vld [vmem:[#allocation5 + $0x220] sm:$0xff]  ;;  %v273_v39 = vld [vmem:[#allocation5 + $0x210] sm:$0xff] }
  0x3f   :  { %v1436_v40 = vpack.c.bf16 %v278_v33, %v274_v32  ;;  %v277_v41 = vld [vmem:[#allocation5 + $0x230] sm:$0xff]  ;;  %v280_v42 = vld [vmem:[#allocation5 + $0x248] sm:$0xff]  ;;  %v282_v44 = vld [vmem:[#allocation5 + $0x258] sm:$0xff]  ;;  %v1374_v46 = vpack.c.bf16 %v275_v38, %v271_v37 }
  0x40   :  { %1363 = vmatpush1.bf16.msra.mxu0 %v1362_v10  ;;  %v284_v43 = vld [vmem:[#allocation5 + $0x268] sm:$0xff]  ;;  %v286_v45 = vld [vmem:[#allocation5 + $0x278] sm:$0xff]  ;;  %v1438_v47 = vpack.c.bf16 %v277_v41, %v273_v39  ;;  %v279_v49 = vld [vmem:[#allocation5 + $0x240] sm:$0xff] }
  0x41   :  { %1427 = vmatpush1.bf16.msra.mxu1 %v1426_v11  ;;  %1365 = vmatprep.subr.bf16.mxu0 %v1364_v12  ;;  %v1376_v48 = vpack.c.bf16 %v284_v43, %v280_v42  ;;  %v283_v50 = vld [vmem:[#allocation5 + $0x260] sm:$0xff]  ;;  %v281_v51 = vld [vmem:[#allocation5 + $0x250] sm:$0xff]  ;;  %v1440_v52 = vpack.c.bf16 %v286_v45, %v282_v44  ;;  %v288_v54 = vld [vmem:[#allocation5 + $0x288] sm:$0xff] }
  0x42   :  { %1429 = vmatprep.subr.bf16.mxu1 %v1428_v16  ;;  %v285_v53 = vld [vmem:[#allocation5 + $0x270] sm:$0xff]  ;;  %v292_v55 = vld [vmem:[#allocation5 + $0x2a8] sm:$0xff]  ;;  %v290_v56 = vld [vmem:[#allocation5 + $0x298] sm:$0xff]  ;;  %v1378_v58 = vpack.c.bf16 %v283_v50, %v279_v49 }
  0x43   :  { %v294_v57 = vld [vmem:[#allocation5 + $0x2b8] sm:$0xff]  ;;  %v1442_v59 = vpack.c.bf16 %v285_v53, %v281_v51  ;;  %v1380_v60 = vpack.c.bf16 %v292_v55, %v288_v54  ;;  %v287_v61 = vld [vmem:[#allocation5 + $0x280] sm:$0xff]  ;;  %v289_v63 = vld [vmem:[#allocation5 + $0x290] sm:$0xff] }
  0x44   :  { %1367 = vmatpush1.bf16.msra.mxu0 %v1366_v22  ;;  %v291_v62 = vld [vmem:[#allocation5 + $0x2a0] sm:$0xff]  ;;  %v1444_v0 = vpack.c.bf16 %v294_v57, %v290_v56  ;;  %v293_v1 = vld [vmem:[#allocation5 + $0x2b0] sm:$0xff]  ;;  %v296_v2 = vld [vmem:[#allocation5 + $0x2c8] sm:$0xff] }
  0x45   :  { %1431 = vmatpush1.bf16.msra.mxu1 %v1430_v23  ;;  %1369 = vmatprep.subr.bf16.mxu0 %v1368_v24  ;;  %v300_v3 = vld [vmem:[#allocation5 + $0x2e8] sm:$0xff]  ;;  %v298_v4 = vld [vmem:[#allocation5 + $0x2d8] sm:$0xff]  ;;  %v1382_v6 = vpack.c.bf16 %v291_v62, %v287_v61  ;;  %v295_v7 = vld [vmem:[#allocation5 + $0x2c0] sm:$0xff]  ;;  %v1446_v8 = vpack.c.bf16 %v293_v1, %v289_v63 }
  0x46   :  { %1433 = vmatprep.subr.bf16.mxu1 %v1432_v28  ;;  %v302_v5 = vld [vmem:[#allocation5 + $0x2f8] sm:$0xff]  ;;  %v1384_v9 = vpack.c.bf16 %v300_v3, %v296_v2  ;;  %v299_v10 = vld [vmem:[#allocation5 + $0x2e0] sm:$0xff]  ;;  %v297_v11 = vld [vmem:[#allocation5 + $0x2d0] sm:$0xff] }
  0x47   :  { %v301_v12 = vld [vmem:[#allocation5 + $0x2f0] sm:$0xff]  ;;  %v1448_v13 = vpack.c.bf16 %v302_v5, %v298_v4  ;;  %v304_v14 = vld [vmem:[#allocation5 + $0x308] sm:$0xff]  ;;  %v306_v17 = vld [vmem:[#allocation5 + $0x318] sm:$0xff]  ;;  %v1386_v19 = vpack.c.bf16 %v299_v10, %v295_v7 }
  0x48   :  { %1371 = vmatpush1.bf16.msra.mxu0 %v1370_v34  ;;  %v308_v15 = vld [vmem:[#allocation5 + $0x328] sm:$0xff]  ;;  %v310_v18 = vld [vmem:[#allocation5 + $0x338] sm:$0xff]  ;;  %v1450_v20 = vpack.c.bf16 %v301_v12, %v297_v11  ;;  %v303_v22 = vld [vmem:[#allocation5 + $0x300] sm:$0xff] }
  0x49   :  { %1435 = vmatpush1.bf16.msra.mxu1 %v1434_v35  ;;  %1373 = vmatprep.subr.bf16.mxu0 %v1372_v36  ;;  %v176_v16 = vld [vmem:[#allocation2 + $0x8] sm:$0xff]  ;;  %v1388_v21 = vpack.c.bf16 %v308_v15, %v304_v14  ;;  %v307_v23 = vld [vmem:[#allocation5 + $0x320] sm:$0xff]  ;;  %v305_v24 = vld [vmem:[#allocation5 + $0x310] sm:$0xff]  ;;  %v1452_v25 = vpack.c.bf16 %v310_v18, %v306_v17 }
  0x4a   :  { %1437 = vmatprep.subr.bf16.mxu1 %v1436_v40  ;;  %399 = vmatprep.mubr.f32.mxu0 %v176_v16  ;;  %v309_v26 = vld [vmem:[#allocation5 + $0x330] sm:$0xff]  ;;  %v312_v27 = vld [vmem:[#allocation5 + $0x348] sm:$0xff]  ;;  %v314_v29 = vld [vmem:[#allocation5 + $0x358] sm:$0xff]  ;;  %v1390_v31 = vpack.c.bf16 %v307_v23, %v303_v22 }
  0x4b   :  { %560 = vmatprep.mubr.f32.mxu1 %v176_v16  ;;  %v316_v28 = vld [vmem:[#allocation5 + $0x368] sm:$0xff]  ;;  %v318_v30 = vld [vmem:[#allocation5 + $0x378] sm:$0xff]  ;;  %v1454_v32 = vpack.c.bf16 %v309_v26, %v305_v24  ;;  %v311_v34 = vld [vmem:[#allocation5 + $0x340] sm:$0xff] }
  0x4c   :  { %1375 = vmatpush1.bf16.msra.mxu0 %v1374_v46  ;;  %v1392_v33 = vpack.c.bf16 %v316_v28, %v312_v27  ;;  %v315_v35 = vld [vmem:[#allocation5 + $0x360] sm:$0xff]  ;;  %v313_v36 = vld [vmem:[#allocation5 + $0x350] sm:$0xff]  ;;  %v1456_v37 = vpack.c.bf16 %v318_v30, %v314_v29  ;;  %v320_v39 = vld [vmem:[#allocation5 + $0x388] sm:$0xff] }
  0x4d   :  { %1439 = vmatpush1.bf16.msra.mxu1 %v1438_v47  ;;  %1377 = vmatprep.subr.bf16.mxu0 %v1376_v48  ;;  %v317_v38 = vld [vmem:[#allocation5 + $0x370] sm:$0xff]  ;;  %v324_v40 = vld [vmem:[#allocation5 + $0x3a8] sm:$0xff]  ;;  %v322_v41 = vld [vmem:[#allocation5 + $0x398] sm:$0xff]  ;;  %v1394_v43 = vpack.c.bf16 %v315_v35, %v311_v34 }
  0x4e   :  { %1441 = vmatprep.subr.bf16.mxu1 %v1440_v52  ;;  %v326_v42 = vld [vmem:[#allocation5 + $0x3b8] sm:$0xff]  ;;  %v1458_v44 = vpack.c.bf16 %v317_v38, %v313_v36  ;;  %v1396_v45 = vpack.c.bf16 %v324_v40, %v320_v39  ;;  %v319_v46 = vld [vmem:[#allocation5 + $0x380] sm:$0xff]  ;;  %v321_v48 = vld [vmem:[#allocation5 + $0x390] sm:$0xff] }
  0x4f   :  { %v323_v47 = vld [vmem:[#allocation5 + $0x3a0] sm:$0xff]  ;;  %v1460_v49 = vpack.c.bf16 %v326_v42, %v322_v41  ;;  %v325_v50 = vld [vmem:[#allocation5 + $0x3b0] sm:$0xff]  ;;  %v328_v51 = vld [vmem:[#allocation5 + $0x3c8] sm:$0xff] }
  0x50   :  { %1379 = vmatpush1.bf16.msra.mxu0 %v1378_v58  ;;  %v332_v52 = vld [vmem:[#allocation5 + $0x3e8] sm:$0xff]  ;;  %v330_v53 = vld [vmem:[#allocation5 + $0x3d8] sm:$0xff]  ;;  %v1398_v55 = vpack.c.bf16 %v323_v47, %v319_v46  ;;  %v1462_v56 = vpack.c.bf16 %v325_v50, %v321_v48  ;;  %v327_v58 = vld [vmem:[#allocation5 + $0x3c0] sm:$0xff] }
  0x51   :  { %1443 = vmatpush1.bf16.msra.mxu1 %v1442_v59  ;;  %1381 = vmatprep.subr.bf16.mxu0 %v1380_v60  ;;  %v334_v54 = vld [vmem:[#allocation5 + $0x3f8] sm:$0xff]  ;;  %v1400_v57 = vpack.c.bf16 %v332_v52, %v328_v51  ;;  %v331_v59 = vld [vmem:[#allocation5 + $0x3e0] sm:$0xff]  ;;  %v329_v61 = vld [vmem:[#allocation5 + $0x3d0] sm:$0xff] }
  0x52   :  { %1445 = vmatprep.subr.bf16.mxu1 %v1444_v0  ;;  %v1464_v60 = vpack.c.bf16 %v334_v54, %v330_v53  ;;  %v333_v62 = vld [vmem:[#allocation5 + $0x3f0] sm:$0xff]  ;;  %v1402_v63 = vpack.c.bf16 %v331_v59, %v327_v58  ;;  %v175_v1 = vld [vmem:[#allocation2] sm:$0xff]  ;;  %v178_v2 = vld [vmem:[#allocation2 + $0x18] sm:$0xff] }
  0x53   :  { %v1466_v0 = vpack.c.bf16 %v333_v62, %v329_v61  ;;  %v177_v3 = vld [vmem:[#allocation2 + $0x10] sm:$0xff]  ;;  %v180_v4 = vld [vmem:[#allocation2 + $0x28] sm:$0xff]  ;;  %v179_v5 = vld [vmem:[#allocation2 + $0x20] sm:$0xff] }
  0x54   :  { %1383 = vmatpush1.bf16.msra.mxu0 %v1382_v6  ;;  %v182_v6 = vld [vmem:[#allocation2 + $0x38] sm:$0xff]  ;;  %v181_v7 = vld [vmem:[#allocation2 + $0x30] sm:$0xff]  ;;  %v188_v12 = vld [vmem:[#allocation2 + $0x68] sm:$0xff] }
  0x55   :  { %1447 = vmatpush1.bf16.msra.mxu1 %v1446_v8  ;;  %1385 = vmatprep.subr.bf16.mxu0 %v1384_v9  ;;  %v184_v8 = vld [vmem:[#allocation2 + $0x48] sm:$0xff]  ;;  %v183_v9 = vld [vmem:[#allocation2 + $0x40] sm:$0xff]  ;;  %v186_v10 = vld [vmem:[#allocation2 + $0x58] sm:$0xff] }
  0x56   :  { %1449 = vmatprep.subr.bf16.mxu1 %v1448_v13  ;;  %v185_v11 = vld [vmem:[#allocation2 + $0x50] sm:$0xff]  ;;  %v187_v13 = vld [vmem:[#allocation2 + $0x60] sm:$0xff]  ;;  %v190_v14 = vld [vmem:[#allocation2 + $0x78] sm:$0xff] }
  0x57   :  { %v189_v15 = vld [vmem:[#allocation2 + $0x70] sm:$0xff]  ;;  %v192_v16 = vld [vmem:[#allocation2 + $0x88] sm:$0xff]  ;;  %v191_v17 = vld [vmem:[#allocation2 + $0x80] sm:$0xff] }
  0x58   :  { %1387 = vmatpush1.bf16.msra.mxu0 %v1386_v19  ;;  %v194_v18 = vld [vmem:[#allocation2 + $0x98] sm:$0xff]  ;;  %v193_v19 = vld [vmem:[#allocation2 + $0x90] sm:$0xff]  ;;  %v200_v24 = vld [vmem:[#allocation2 + $0xc8] sm:$0xff] }
  0x59   :  { %1451 = vmatpush1.bf16.msra.mxu1 %v1450_v20  ;;  %1389 = vmatprep.subr.bf16.mxu0 %v1388_v21  ;;  %v196_v20 = vld [vmem:[#allocation2 + $0xa8] sm:$0xff]  ;;  %v195_v21 = vld [vmem:[#allocation2 + $0xa0] sm:$0xff]  ;;  %v198_v22 = vld [vmem:[#allocation2 + $0xb8] sm:$0xff] }
  0x5a   :  { %1453 = vmatprep.subr.bf16.mxu1 %v1452_v25  ;;  %v197_v23 = vld [vmem:[#allocation2 + $0xb0] sm:$0xff]  ;;  %v199_v25 = vld [vmem:[#allocation2 + $0xc0] sm:$0xff]  ;;  %v202_v26 = vld [vmem:[#allocation2 + $0xd8] sm:$0xff] }
  0x5b   :  { %v201_v27 = vld [vmem:[#allocation2 + $0xd0] sm:$0xff]  ;;  %v204_v28 = vld [vmem:[#allocation2 + $0xe8] sm:$0xff]  ;;  %v203_v29 = vld [vmem:[#allocation2 + $0xe0] sm:$0xff] }
  0x5c   :  { %1391 = vmatpush1.bf16.msra.mxu0 %v1390_v31  ;;  %v206_v30 = vld [vmem:[#allocation2 + $0xf8] sm:$0xff]  ;;  %v205_v31 = vld [vmem:[#allocation2 + $0xf0] sm:$0xff]  ;;  %v852_v35 = vld [vmem:[%s2084_s2] sm:$0xf]  ;;  %s1682_s2 = smov [#allocation7]  }
  0x5d   :  { %1455 = vmatpush1.bf16.msra.mxu1 %v1454_v32  ;;  %1393 = vmatprep.subr.bf16.mxu0 %v1392_v33  ;;  %v854_v32 = vlaneseq  ;;  %s1327_s13 = sshll.u32 %s1682_s2, 4  ;;  %s1328_s13 = int_to_ptr.vmem [resolvable:$true] %s1327_s13 }
  0x5e   :  { %1457 = vmatprep.subr.bf16.mxu1 %v1456_v37  ;;  %s1648_s14 = scalar_lea.vmem %s1328_s13, 8192  ;;  %p1653_p3 = scmp.lt.s32.totalorder %s1328_s13, %s1328_s13 }
  0x5f   :  { %v855_v33 = vshrl.u32 %v854_v32, 7  ;;  %p1649_p2 = scmp.ne.s32.totalorder %s1328_s13, %s1648_s14  ;;  %p1654_p4 = scmp.lt.s32.totalorder %s1648_s14, %s1648_s14 }
  0x60   :  { %1395 = vmatpush1.bf16.msra.mxu0 %v1394_v43 }
  0x61   :  { %1459 = vmatpush1.bf16.msra.mxu1 %v1458_v44  ;;  %1397 = vmatprep.subr.bf16.mxu0 %v1396_v45  ;;  %v856_v34 = vsub.s32 0, %v855_v33  ;;  %v864_v36 = vsub.s32 2, %v855_v33  ;;  %v860_v37 = vsub.s32 1, %v855_v33  ;;  %v868_v38 = vsub.s32 3, %v855_v33  ;;  %p1655_p5 = por %p1654_p4, %p1653_p3 }
  0x62   :  { %1461 = vmatprep.subr.bf16.mxu1 %v1460_v49 }
  0x63   :  { %v1733_v39 = vrot.slane %v852_v35, %v856_v34  ;;  %v1735_v41 = vrot.slane %v852_v35, %v864_v36  ;;  %v1737_v42 = vrot.slane %v852_v35, %v860_v37  ;;  %v1739_v45 = vrot.slane %v852_v35, %v868_v38  ;;  %p1656_p6 = pnand %p1655_p5, %p1649_p2 }
  0x64   :  { %1399 = vmatpush1.bf16.msra.mxu0 %v1398_v55 }
  0x65   :  { %1463 = vmatpush1.bf16.msra.mxu1 %v1462_v56  ;;  %1401 = vmatprep.subr.bf16.mxu0 %v1400_v57 }
  0x66   :  { %1465 = vmatprep.subr.bf16.mxu1 %v1464_v60 }
  0x68   :  { %1403 = vmatpush1.bf16.msra.mxu0 %v1402_v63 }
  0x69   :  { %1467 = vmatpush1.bf16.msra.mxu1 %v1466_v0 }
  0x6b   :  { %400 = vmatmul.mubr.f32.vlgmr.msra.gmra.mrb[0].mxu0 %v175_v1 }
  0x6c   :  { %561 = vmatmul.mubr.f32.vlgmr.msra.gmra.mrb[0].mxu1 %v175_v1  ;;  %405 = vmatprep.mubr.f32.mxu0 %v178_v2 }
  0x6d   :  { %566 = vmatprep.mubr.f32.mxu1 %v178_v2 }
  0x6f   :  { %406 = vmatmul.mubr.f32.gmra.mrb[2].mxu0 %v177_v3 }
  0x70   :  { %567 = vmatmul.mubr.f32.gmra.mrb[2].mxu1 %v177_v3  ;;  %411 = vmatprep.mubr.f32.mxu0 %v180_v4 }
  0x71   :  { %572 = vmatprep.mubr.f32.mxu1 %v180_v4 }
  0x73   :  { %412 = vmatmul.mubr.f32.gmra.mrb[4].mxu0 %v179_v5 }
  0x74   :  { %573 = vmatmul.mubr.f32.gmra.mrb[4].mxu1 %v179_v5  ;;  %417 = vmatprep.mubr.f32.mxu0 %v182_v6 }
  0x75   :  { %578 = vmatprep.mubr.f32.mxu1 %v182_v6 }
  0x77   :  { %418 = vmatmul.mubr.f32.gmra.mrb[6].mxu0 %v181_v7 }
  0x78   :  { %579 = vmatmul.mubr.f32.gmra.mrb[6].mxu1 %v181_v7  ;;  %423 = vmatprep.mubr.f32.mxu0 %v184_v8 }
  0x79   :  { %584 = vmatprep.mubr.f32.mxu1 %v184_v8 }
  0x7b   :  { %424 = vmatmul.mubr.f32.gmra.mrb[8].mxu0 %v183_v9 }
  0x7c   :  { %585 = vmatmul.mubr.f32.gmra.mrb[8].mxu1 %v183_v9  ;;  %429 = vmatprep.mubr.f32.mxu0 %v186_v10 }
  0x7d   :  { %590 = vmatprep.mubr.f32.mxu1 %v186_v10 }
  0x7f   :  { %430 = vmatmul.mubr.f32.gmra.mrb[10].mxu0 %v185_v11 }
  0x80   :  { %591 = vmatmul.mubr.f32.gmra.mrb[10].mxu1 %v185_v11  ;;  %435 = vmatprep.mubr.f32.mxu0 %v188_v12 }
  0x81   :  { %596 = vmatprep.mubr.f32.mxu1 %v188_v12 }
  0x83   :  { %436 = vmatmul.mubr.f32.gmra.mrb[12].mxu0 %v187_v13 }
  0x84   :  { %597 = vmatmul.mubr.f32.gmra.mrb[12].mxu1 %v187_v13  ;;  %441 = vmatprep.mubr.f32.mxu0 %v190_v14 }
  0x85   :  { %602 = vmatprep.mubr.f32.mxu1 %v190_v14 }
  0x87   :  { %442 = vmatmul.mubr.f32.gmra.mrb[14].mxu0 %v189_v15 }
  0x88   :  { %603 = vmatmul.mubr.f32.gmra.mrb[14].mxu1 %v189_v15  ;;  %447 = vmatprep.mubr.f32.mxu0 %v192_v16 }
  0x89   :  { %608 = vmatprep.mubr.f32.mxu1 %v192_v16 }
  0x8b   :  { %448 = vmatmul.mubr.f32.gmra.mrb[16].mxu0 %v191_v17 }
  0x8c   :  { %609 = vmatmul.mubr.f32.gmra.mrb[16].mxu1 %v191_v17  ;;  %453 = vmatprep.mubr.f32.mxu0 %v194_v18 }
  0x8d   :  { %614 = vmatprep.mubr.f32.mxu1 %v194_v18 }
  0x8f   :  { %454 = vmatmul.mubr.f32.gmra.mrb[18].mxu0 %v193_v19 }
  0x90   :  { %615 = vmatmul.mubr.f32.gmra.mrb[18].mxu1 %v193_v19  ;;  %459 = vmatprep.mubr.f32.mxu0 %v196_v20 }
  0x91   :  { %620 = vmatprep.mubr.f32.mxu1 %v196_v20 }
  0x93   :  { %460 = vmatmul.mubr.f32.gmra.mrb[20].mxu0 %v195_v21 }
  0x94   :  { %621 = vmatmul.mubr.f32.gmra.mrb[20].mxu1 %v195_v21  ;;  %465 = vmatprep.mubr.f32.mxu0 %v198_v22 }
  0x95   :  { %626 = vmatprep.mubr.f32.mxu1 %v198_v22 }
  0x97   :  { %466 = vmatmul.mubr.f32.gmra.mrb[22].mxu0 %v197_v23 }
  0x98   :  { %627 = vmatmul.mubr.f32.gmra.mrb[22].mxu1 %v197_v23  ;;  %471 = vmatprep.mubr.f32.mxu0 %v200_v24 }
  0x99   :  { %632 = vmatprep.mubr.f32.mxu1 %v200_v24 }
  0x9b   :  { %472 = vmatmul.mubr.f32.gmra.mrb[24].mxu0 %v199_v25 }
  0x9c   :  { %633 = vmatmul.mubr.f32.gmra.mrb[24].mxu1 %v199_v25  ;;  %477 = vmatprep.mubr.f32.mxu0 %v202_v26 }
  0x9d   :  { %638 = vmatprep.mubr.f32.mxu1 %v202_v26 }
  0x9f   :  { %478 = vmatmul.mubr.f32.gmra.mrb[26].mxu0 %v201_v27 }
  0xa0   :  { %639 = vmatmul.mubr.f32.gmra.mrb[26].mxu1 %v201_v27  ;;  %483 = vmatprep.mubr.f32.mxu0 %v204_v28 }
  0xa1   :  { %644 = vmatprep.mubr.f32.mxu1 %v204_v28 }
  0xa3   :  { %484 = vmatmul.mubr.f32.gmra.mrb[28].mxu0 %v203_v29 }
  0xa4   :  { %645 = vmatmul.mubr.f32.gmra.mrb[28].mxu1 %v203_v29  ;;  %489 = vmatprep.mubr.f32.mxu0 %v206_v30 }
  0xa5   :  { %650 = vmatprep.mubr.f32.mxu1 %v206_v30 }
  0xa7   :  { %490 = vmatmul.mubr.f32.gmra.mrb[30].mxu0 %v205_v31 }
  0xa8   :  { %651 = vmatmul.mubr.f32.gmra.mrb[30].mxu1 %v205_v31 }
 0x13e   :  { %v401_v40 = vpop.f32.mrb[0].mxu0 }
 0x13f   :  { %v562_v43 = vpop.f32.mrb[0].mxu1  ;;  %v403_v44 = vpop.f32.mrb[1].mxu0  ;;  %v874_v47 = vadd.f32 %v1733_v39, %v401_v40 }
 0x140   :  { %v564_v46 = vpop.f32.mrb[1].mxu1  ;;  %v876_v48 = vadd.f32 %v1735_v41, %v562_v43  ;;  %v875_v49 = vadd.f32 %v1737_v42, %v403_v44 }
 0x141   :  { %v1002_v51 = vmul.f32 0.70710677, %v874_v47  ;;  %v877_v52 = vadd.f32 %v1739_v45, %v564_v46  ;;  %v938_v5 = vmul.f32 0.5, %v874_v47 }
 0x142   :  { %v407_v50 = vpop.f32.mrb[2].mxu0  ;;  %v1004_v55 = vmul.f32 0.70710677, %v876_v48  ;;  %v1003_v56 = vmul.f32 0.70710677, %v875_v49  ;;  %v940_v8 = vmul.f32 0.5, %v876_v48 }
 0x143   :  { %v568_v53 = vpop.f32.mrb[2].mxu1  ;;  %v409_v54 = vpop.f32.mrb[3].mxu0  ;;  %1476 = verf.f32 %v1002_v51  ;;  %v1005_v57 = vmul.f32 0.70710677, %v877_v52  ;;  %v878_v58 = vadd.f32 %v1733_v39, %v407_v50  ;;  %v939_v9 = vmul.f32 0.5, %v875_v49 }
 0x144   :  { %v570_v59 = vpop.f32.mrb[3].mxu1  ;;  %1478 = verf.f32 %v1004_v55  ;;  %v880_v0 = vadd.f32 %v1735_v41, %v568_v53  ;;  %v879_v1 = vadd.f32 %v1737_v42, %v409_v54  ;;  %v941_v16 = vmul.f32 0.5, %v877_v52 }
 0x145   :  { %1480 = verf.f32 %v1003_v56  ;;  %v1006_v61 = vmul.f32 0.70710677, %v878_v58  ;;  %v881_v2 = vadd.f32 %v1739_v45, %v570_v59  ;;  %v942_v19 = vmul.f32 0.5, %v878_v58 }
 0x146   :  { %v413_v60 = vpop.f32.mrb[4].mxu0  ;;  %1482 = verf.f32 %v1005_v57  ;;  %v1008_v6 = vmul.f32 0.70710677, %v880_v0  ;;  %v1007_v7 = vmul.f32 0.70710677, %v879_v1  ;;  %v1754_v20 = vmul.f32 0.5, %v880_v0 }
 0x147   :  { %v574_v62 = vpop.f32.mrb[4].mxu1  ;;  %v415_v63 = vpop.f32.mrb[5].mxu0  ;;  %1484 = verf.f32 %v1006_v61  ;;  %v882_v4 = vadd.f32 %v1733_v39, %v413_v60  ;;  %v1009_v10 = vmul.f32 0.70710677, %v881_v2  ;;  %v943_v31 = vmul.f32 0.5, %v879_v1 }
 0x148   :  { %v576_v3 = vpop.f32.mrb[5].mxu1  ;;  %1486 = verf.f32 %v1008_v6  ;;  %v884_v12 = vadd.f32 %v1735_v41, %v574_v62  ;;  %v1752_v13 = vadd.f32 %v1737_v42, %v415_v63  ;;  %v945_v43 = vmul.f32 0.5, %v881_v2 }
 0x149   :  { %v1010_v11 = vmul.f32 0.70710677, %v882_v4  ;;  %1488 = verf.f32 %v1007_v7  ;;  %v1758_v25 = vadd.f32 %v1739_v45, %v576_v3  ;;  %v946_v50 = vmul.f32 0.5, %v882_v4 }
 0x14a   :  { %v419_v14 = vpop.f32.mrb[6].mxu0  ;;  %1490 = verf.f32 %v1009_v10  ;;  %v1012_v21 = vmul.f32 0.70710677, %v884_v12  ;;  %v1011_v24 = vmul.f32 0.70710677, %v1752_v13  ;;  %v948_v0 = vmul.f32 0.5, %v884_v12 }
 0x14b   :  { %v580_v15 = vpop.f32.mrb[6].mxu1  ;;  %v421_v17 = vpop.f32.mrb[7].mxu0  ;;  %1492 = verf.f32 %v1010_v11  ;;  %v1761_v26 = vadd.f32 %v1733_v39, %v419_v14  ;;  %v1013_v36 = vmul.f32 0.70710677, %v1758_v25  ;;  %v947_v7 = vmul.f32 0.5, %v1752_v13 }
 0x14c   :  { %v582_v18 = vpop.f32.mrb[7].mxu1  ;;  %1494 = verf.f32 %v1012_v21  ;;  %v1764_v32 = vadd.f32 %v1735_v41, %v580_v15  ;;  %v1780_v58 = vadd.f32 %v1737_v42, %v421_v17  ;;  %v949_v13 = vmul.f32 0.5, %v1758_v25 }
 0x14d   :  { %v1477_v23 = vpop.eup %1476  ;;  %1496 = verf.f32 %v1011_v24  ;;  %v1014_v44 = vmul.f32 0.70710677, %v1761_v26  ;;  %v1786_v2 = vadd.f32 %v1739_v45, %v582_v18 }
 0x14e   :  { %v425_v22 = vpop.f32.mrb[8].mxu0  ;;  %v1479_v29 = vpop.eup %1478  ;;  %v1130_v30 = vadd.f32 1.0, %v1477_v23  ;;  %1498 = verf.f32 %v1013_v36  ;;  %v1016_v55 = vmul.f32 0.70710677, %v1764_v32  ;;  %v1015_v1 = vmul.f32 0.70710677, %v1780_v58 }
 0x14f   :  { %v586_v27 = vpop.f32.mrb[8].mxu1  ;;  %v427_v28 = vpop.f32.mrb[9].mxu0  ;;  %v1132_v35 = vadd.f32 1.0, %v1479_v29  ;;  %1500 = verf.f32 %v1014_v44 }
 0x150   :  { %v1766_v33 = vpop.f32.mrb[9].mxu1  ;;  %v1481_v34 = vpop.eup %1480  ;;  %v1194_v38 = vmul.f32 %v1130_v30, %v938_v5  ;;  %1502 = verf.f32 %v1016_v55  ;;  %v1803_v15 = vadd.f32 %v1737_v42, %v427_v28 }
 0x151   :  { %v1483_v37 = vpop.eup %1482  ;;  %v1131_v40 = vadd.f32 1.0, %v1481_v34  ;;  %v1196_v48 = vmul.f32 %v1132_v35, %v940_v8  ;;  %v1794_v8 = vadd.f32 %v1733_v39, %v425_v22  ;;  %1504 = verf.f32 %v1015_v1 }
 0x152   :  { %v1770_v46 = vpop.f32.mrb[10].mxu0  ;;  %v1485_v47 = vpop.eup %1484  ;;  %v1133_v49 = vadd.f32 1.0, %v1483_v37  ;;  %1258 = vst [vmem:[#allocation7] sm:$0xff] %v1194_v38  ;;  %v952_v37 = vmul.f32 0.5, %v1764_v32 }
 0x153   :  { %v1772_v51 = vpop.f32.mrb[10].mxu1  ;;  %v1774_v52 = vpop.f32.mrb[11].mxu0  ;;  %v1195_v53 = vmul.f32 %v1131_v40, %v939_v9  ;;  %v1134_v54 = vadd.f32 1.0, %v1485_v47  ;;  %1260 = vst [vmem:[#allocation7 + $0x10] sm:$0xff] %v1196_v48  ;;  %v1797_v9 = vadd.f32 %v1735_v41, %v586_v27  ;;  %v1018_v27 = vmul.f32 0.70710677, %v1794_v8 }
 0x154   :  { %v1777_v56 = vpop.f32.mrb[11].mxu1  ;;  %v1197_v57 = vmul.f32 %v1133_v49, %v941_v16  ;;  %v1487_v59 = vpop.eup %1486 }
 0x155   :  { %1259 = vst [vmem:[#allocation7 + $0x8] sm:$0xff] %v1195_v53  ;;  %v1198_v60 = vmul.f32 %v1134_v54, %v942_v19  ;;  %v1489_v62 = vpop.eup %1488  ;;  %v1136_v63 = vadd.f32 1.0, %v1487_v59  ;;  %v1017_v19 = vmul.f32 0.70710677, %v1786_v2  ;;  %v1020_v25 = vmul.f32 0.70710677, %v1797_v9 }
 0x156   :  { %v1782_v61 = vpop.f32.mrb[12].mxu0  ;;  %1261 = vst [vmem:[#allocation7 + $0x18] sm:$0xff] %v1197_v57  ;;  %v1491_v5 = vpop.eup %1490  ;;  %v1135_v6 = vadd.f32 1.0, %v1489_v62  ;;  %v893_v53 = vadd.f32 %v1739_v45, %v1766_v33  ;;  %v894_v59 = vadd.f32 %v1733_v39, %v1770_v46  ;;  %v951_v46 = vmul.f32 0.5, %v1780_v58 }
 0x157   :  { %v1788_v3 = vpop.f32.mrb[12].mxu1  ;;  %v1790_v4 = vpop.f32.mrb[13].mxu0  ;;  %1262 = vst [vmem:[#allocation7 + $0x20] sm:$0xff] %v1198_v60  ;;  %v1200_v12 = vmul.f32 %v1136_v63, %v1754_v20  ;;  %v1137_v14 = vadd.f32 1.0, %v1491_v5  ;;  %v950_v20 = vmul.f32 0.5, %v1761_v26  ;;  %1506 = verf.f32 %v1017_v19 }
 0x158   :  { %v1799_v10 = vpop.f32.mrb[13].mxu1  ;;  %v1493_v11 = vpop.eup %1492  ;;  %v1199_v17 = vmul.f32 %v1135_v6, %v943_v31  ;;  %1508 = verf.f32 %v1018_v27  ;;  %v1019_v26 = vmul.f32 0.70710677, %v1803_v15  ;;  %v896_v60 = vadd.f32 %v1735_v41, %v1772_v51 }
 0x159   :  { %v1495_v16 = vpop.eup %1494  ;;  %v1138_v18 = vadd.f32 1.0, %v1493_v11  ;;  %1264 = vst [vmem:[#allocation7 + $0x30] sm:$0xff] %v1200_v12  ;;  %v1201_v23 = vmul.f32 %v1137_v14, %v945_v43  ;;  %1510 = verf.f32 %v1020_v25  ;;  %v1021_v62 = vmul.f32 0.70710677, %v893_v53 }
 0x15a   :  { %v1807_v21 = vpop.f32.mrb[14].mxu0  ;;  %v1497_v22 = vpop.eup %1496  ;;  %v1140_v24 = vadd.f32 1.0, %v1495_v16  ;;  %1263 = vst [vmem:[#allocation7 + $0x28] sm:$0xff] %v1199_v17  ;;  %1512 = verf.f32 %v1019_v26  ;;  %v1836_v63 = vadd.f32 %v1737_v42, %v1774_v52  ;;  %v953_v6 = vmul.f32 0.5, %v1786_v2 }
 0x15b   :  { %v1811_v29 = vpop.f32.mrb[14].mxu1  ;;  %v1813_v28 = vpop.f32.mrb[15].mxu0  ;;  %v1202_v30 = vmul.f32 %v1138_v18, %v946_v50  ;;  %v1139_v31 = vadd.f32 1.0, %v1497_v22  ;;  %1265 = vst [vmem:[#allocation7 + $0x38] sm:$0xff] %v1201_v23  ;;  %v1022_v51 = vmul.f32 0.70710677, %v894_v59  ;;  %1514 = verf.f32 %v1021_v62 }
 0x15c   :  { %v1816_v34 = vpop.f32.mrb[15].mxu1  ;;  %v1499_v35 = vpop.eup %1498  ;;  %v1204_v36 = vmul.f32 %v1140_v24, %v948_v0  ;;  %v1840_v0 = vadd.f32 %v1739_v45, %v1777_v56  ;;  %v954_v12 = vmul.f32 0.5, %v1794_v8  ;;  %v1024_v56 = vmul.f32 0.70710677, %v896_v60 }
 0x15d   :  { %v1501_v38 = vpop.eup %1500  ;;  %1266 = vst [vmem:[#allocation7 + $0x40] sm:$0xff] %v1202_v30  ;;  %v1203_v40 = vmul.f32 %v1139_v31, %v947_v7  ;;  %v1141_v43 = vadd.f32 1.0, %v1499_v35  ;;  %v956_v16 = vmul.f32 0.5, %v1797_v9  ;;  %1516 = verf.f32 %v1022_v51 }
 0x15e   :  { %v1820_v44 = vpop.f32.mrb[16].mxu0  ;;  %1268 = vst [vmem:[#allocation7 + $0x50] sm:$0xff] %v1204_v36  ;;  %v1142_v47 = vadd.f32 1.0, %v1501_v38  ;;  %v1503_v50 = vpop.eup %1502  ;;  %v1023_v58 = vmul.f32 0.70710677, %v1836_v63  ;;  %1518 = verf.f32 %v1024_v56  ;;  %v1866_v27 = vadd.f32 %v1735_v41, %v1788_v3 }
 0x15f   :  { %v1822_v48 = vpop.f32.mrb[16].mxu1  ;;  %v1824_v49 = vpop.f32.mrb[17].mxu0  ;;  %1267 = vst [vmem:[#allocation7 + $0x48] sm:$0xff] %v1203_v40  ;;  %v1205_v32 = vmul.f32 %v1141_v43, %v949_v13  ;;  %v1144_v57 = vadd.f32 1.0, %v1503_v50  ;;  %v1025_v2 = vmul.f32 0.70710677, %v1840_v0  ;;  %v1872_v36 = vadd.f32 %v1737_v42, %v1790_v4 }
 0x160   :  { %v1828_v54 = vpop.f32.mrb[17].mxu1  ;;  %v1206_v55 = vmul.f32 %v1142_v47, %v950_v20  ;;  %v1505_v1 = vpop.eup %1504  ;;  %1520 = verf.f32 %v1023_v58  ;;  %v898_v20 = vadd.f32 %v1733_v39, %v1782_v61  ;;  %v955_v61 = vmul.f32 0.5, %v1803_v15 }
 0x161   :  { %1269 = vst [vmem:[#allocation7 + $0x58] sm:$0xff] %v1205_v32  ;;  %v1208_v5 = vmul.f32 %v1144_v57, %v952_v37  ;;  %v1143_v52 = vadd.f32 1.0, %v1505_v1  ;;  %v1507_v17 = vpop.eup %1506  ;;  %1522 = verf.f32 %v1025_v2  ;;  %v1876_v37 = vadd.f32 %v1739_v45, %v1799_v10 }
 0x162   :  { %v1842_v33 = vpop.f32.mrb[18].mxu0  ;;  %1270 = vst [vmem:[#allocation7 + $0x60] sm:$0xff] %v1206_v55  ;;  %v1509_v19 = vpop.eup %1508  ;;  %v1145_v22 = vadd.f32 1.0, %v1507_v17  ;;  %v1026_v40 = vmul.f32 0.70710677, %v898_v20  ;;  %v957_v47 = vmul.f32 0.5, %v893_v53  ;;  %v1907_v58 = vadd.f32 %v1737_v42, %v1813_v28 }
 0x163   :  { %v1846_v7 = vpop.f32.mrb[18].mxu1  ;;  %v1848_v11 = vpop.f32.mrb[19].mxu0  ;;  %1272 = vst [vmem:[#allocation7 + $0x70] sm:$0xff] %v1208_v5  ;;  %v1207_v18 = vmul.f32 %v1143_v52, %v951_v46  ;;  %v1146_v9 = vadd.f32 1.0, %v1509_v19  ;;  %v958_v50 = vmul.f32 0.5, %v894_v59  ;;  %v960_v57 = vmul.f32 0.5, %v896_v60 }
 0x164   :  { %v1851_v14 = vpop.f32.mrb[19].mxu1  ;;  %v1511_v24 = vpop.eup %1510  ;;  %v1209_v25 = vmul.f32 %v1145_v22, %v953_v6  ;;  %v1028_v32 = vmul.f32 0.70710677, %v1866_v27  ;;  %1524 = verf.f32 %v1026_v40  ;;  %v1027_v15 = vmul.f32 0.70710677, %v1872_v36 }
 0x165   :  { %1271 = vst [vmem:[#allocation7 + $0x68] sm:$0xff] %v1207_v18  ;;  %v1513_v31 = vpop.eup %1512  ;;  %v1148_v35 = vadd.f32 1.0, %v1511_v24  ;;  %v1210_v26 = vmul.f32 %v1146_v9, %v954_v12  ;;  %v1029_v1 = vmul.f32 0.70710677, %v1876_v37  ;;  %v1894_v60 = vadd.f32 %v1733_v39, %v1807_v21 }
 0x166   :  { %v1856_v13 = vpop.f32.mrb[20].mxu0  ;;  %v1147_v38 = vadd.f32 1.0, %v1513_v31  ;;  %1273 = vst [vmem:[#allocation7 + $0x78] sm:$0xff] %v1209_v25  ;;  %1526 = verf.f32 %v1028_v32  ;;  %v1515_v53 = vpop.eup %1514  ;;  %v1898_v6 = vadd.f32 %v1735_v41, %v1811_v29  ;;  %v1911_v21 = vadd.f32 %v1739_v45, %v1816_v34 }
 0x167   :  { %v1858_v8 = vpop.f32.mrb[20].mxu1  ;;  %v1860_v23 = vpop.f32.mrb[21].mxu0  ;;  %v1212_v43 = vmul.f32 %v1148_v35, %v956_v16  ;;  %1274 = vst [vmem:[#allocation7 + $0x80] sm:$0xff] %v1210_v26  ;;  %1528 = verf.f32 %v1027_v15  ;;  %v1149_v46 = vadd.f32 1.0, %v1515_v53  ;;  %v959_v16 = vmul.f32 0.5, %v1836_v63 }
 0x168   :  { %v1868_v30 = vpop.f32.mrb[21].mxu1  ;;  %v1211_v10 = vmul.f32 %v1147_v38, %v955_v61  ;;  %v1517_v5 = vpop.eup %1516  ;;  %1530 = verf.f32 %v1029_v1  ;;  %v1030_v19 = vmul.f32 0.70710677, %v1894_v60  ;;  %v1918_v22 = vadd.f32 %v1733_v39, %v1820_v44 }
 0x169   :  { %1276 = vst [vmem:[#allocation7 + $0x90] sm:$0xff] %v1212_v43  ;;  %v1519_v12 = vpop.eup %1518  ;;  %v1150_v56 = vadd.f32 1.0, %v1517_v5  ;;  %v1213_v17 = vmul.f32 %v1149_v46, %v957_v47  ;;  %v961_v28 = vmul.f32 0.5, %v1840_v0  ;;  %v1032_v31 = vmul.f32 0.70710677, %v1898_v6 }
 0x16a   :  { %v1879_v3 = vpop.f32.mrb[22].mxu0  ;;  %1275 = vst [vmem:[#allocation7 + $0x88] sm:$0xff] %v1211_v10  ;;  %v1521_v29 = vpop.eup %1520  ;;  %v1152_v18 = vadd.f32 1.0, %v1519_v12  ;;  %v962_v26 = vmul.f32 0.5, %v898_v20  ;;  %1532 = verf.f32 %v1030_v19  ;;  %v964_v40 = vmul.f32 0.5, %v1866_v27 }
 0x16b   :  { %v1882_v55 = vpop.f32.mrb[22].mxu1  ;;  %v1884_v4 = vpop.f32.mrb[23].mxu0  ;;  %v1214_v24 = vmul.f32 %v1150_v56, %v958_v50  ;;  %v1151_v9 = vadd.f32 1.0, %v1521_v29  ;;  %1277 = vst [vmem:[#allocation7 + $0x98] sm:$0xff] %v1213_v17  ;;  %1534 = verf.f32 %v1032_v31  ;;  %v1031_v0 = vmul.f32 0.70710677, %v1907_v58 }
 0x16c   :  { %v1887_v62 = vpop.f32.mrb[23].mxu1  ;;  %v1523_v63 = vpop.eup %1522  ;;  %v1216_v25 = vmul.f32 %v1152_v18, %v960_v57  ;;  %v963_v50 = vmul.f32 0.5, %v1872_v36  ;;  %v1033_v20 = vmul.f32 0.70710677, %v1911_v21  ;;  %v1034_v32 = vmul.f32 0.70710677, %v1918_v22 }
 0x16d   :  { %v1153_v35 = vadd.f32 1.0, %v1523_v63  ;;  %1278 = vst [vmem:[#allocation7 + $0xa0] sm:$0xff] %v1214_v24  ;;  %v1215_v44 = vmul.f32 %v1151_v9, %v959_v16  ;;  %1536 = verf.f32 %v1031_v0  ;;  %v908_v36 = vadd.f32 %v1735_v41, %v1822_v48 }
 0x16e   :  { %v1890_v59 = vpop.f32.mrb[24].mxu0  ;;  %1280 = vst [vmem:[#allocation7 + $0xb0] sm:$0xff] %v1216_v25  ;;  %v1525_v10 = vpop.eup %1524  ;;  %1538 = verf.f32 %v1033_v20  ;;  %v907_v12 = vadd.f32 %v1737_v42, %v1824_v49  ;;  %v909_v18 = vadd.f32 %v1739_v45, %v1828_v54  ;;  %v1951_v19 = vadd.f32 %v1733_v39, %v1842_v33 }
 0x16f   :  { %v1900_v51 = vpop.f32.mrb[24].mxu1  ;;  %v1902_v52 = vpop.f32.mrb[25].mxu0  ;;  %v1217_v47 = vmul.f32 %v1153_v35, %v961_v28  ;;  %1279 = vst [vmem:[#allocation7 + $0xa8] sm:$0xff] %v1215_v44  ;;  %v1154_v27 = vadd.f32 1.0, %v1525_v10  ;;  %1540 = verf.f32 %v1034_v32  ;;  %v965_v24 = vmul.f32 0.5, %v1876_v37 }
 0x170   :  { %v1913_v2 = vpop.f32.mrb[25].mxu1  ;;  %v1527_v15 = vpop.eup %1526  ;;  %v1036_v48 = vmul.f32 0.70710677, %v908_v36  ;;  %v966_v31 = vmul.f32 0.5, %v1894_v60  ;;  %v968_v25 = vmul.f32 0.5, %v1898_v6  ;;  %v967_v44 = vmul.f32 0.5, %v1907_v58 }
 0x171   :  { %1281 = vst [vmem:[#allocation7 + $0xb8] sm:$0xff] %v1217_v47  ;;  %v1529_v5 = vpop.eup %1528  ;;  %v1156_v46 = vadd.f32 1.0, %v1527_v15  ;;  %v1218_v29 = vmul.f32 %v1154_v27, %v962_v26  ;;  %v1035_v35 = vmul.f32 0.70710677, %v907_v12  ;;  %v1037_v37 = vmul.f32 0.70710677, %v909_v18 }
 0x172   :  { %v1922_v34 = vpop.f32.mrb[26].mxu0  ;;  %v1531_v16 = vpop.eup %1530  ;;  %v1155_v17 = vadd.f32 1.0, %v1529_v5  ;;  %1542 = verf.f32 %v1036_v48  ;;  %v1038_v60 = vmul.f32 0.70710677, %v1951_v19  ;;  %v912_v6 = vadd.f32 %v1735_v41, %v1846_v7 }
 0x173   :  { %v1924_v61 = vpop.f32.mrb[26].mxu1  ;;  %v1926_v38 = vpop.f32.mrb[27].mxu0  ;;  %v1220_v63 = vmul.f32 %v1156_v46, %v964_v40  ;;  %v1157_v9 = vadd.f32 1.0, %v1531_v16  ;;  %1282 = vst [vmem:[#allocation7 + $0xc0] sm:$0xff] %v1218_v29  ;;  %1544 = verf.f32 %v1035_v35  ;;  %v969_v32 = vmul.f32 0.5, %v1911_v21 }
 0x174   :  { %v1930_v43 = vpop.f32.mrb[27].mxu1  ;;  %v1219_v49 = vmul.f32 %v1155_v17, %v963_v50  ;;  %v1533_v0 = vpop.eup %1532  ;;  %1546 = verf.f32 %v1037_v37  ;;  %v1040_v58 = vmul.f32 0.70710677, %v912_v6  ;;  %v911_v27 = vadd.f32 %v1737_v42, %v1848_v11 }
 0x175   :  { %1284 = vst [vmem:[#allocation7 + $0xd0] sm:$0xff] %v1220_v63  ;;  %v1221_v33 = vmul.f32 %v1157_v9, %v965_v24  ;;  %v1535_v47 = vpop.eup %1534  ;;  %v1158_v50 = vadd.f32 1.0, %v1533_v0  ;;  %1548 = verf.f32 %v1038_v60  ;;  %v1973_v5 = vadd.f32 %v1739_v45, %v1851_v14 }
 0x176   :  { %v1935_v57 = vpop.f32.mrb[28].mxu0  ;;  %1283 = vst [vmem:[#allocation7 + $0xc8] sm:$0xff] %v1219_v49  ;;  %v1160_v20 = vadd.f32 1.0, %v1535_v47  ;;  %v1977_v7 = vadd.f32 %v1733_v39, %v1856_v13  ;;  %1550 = verf.f32 %v1040_v58  ;;  %v970_v63 = vmul.f32 0.5, %v1918_v22 }
 0x177   :  { %v1937_v1 = vpop.f32.mrb[28].mxu1  ;;  %v1939_v53 = vpop.f32.mrb[29].mxu0  ;;  %1285 = vst [vmem:[#allocation7 + $0xd8] sm:$0xff] %v1221_v33  ;;  %v1222_v15 = vmul.f32 %v1158_v50, %v966_v31  ;;  %v972_v24 = vmul.f32 0.5, %v908_v36  ;;  %v1039_v9 = vmul.f32 0.70710677, %v911_v27  ;;  %v915_v0 = vadd.f32 %v1737_v42, %v1860_v23 }
 0x178   :  { %v1945_v56 = vpop.f32.mrb[29].mxu1  ;;  %v1537_v10 = vpop.eup %1536  ;;  %v1224_v16 = vmul.f32 %v1160_v20, %v968_v25  ;;  %v971_v14 = vmul.f32 0.5, %v907_v12  ;;  %v1041_v49 = vmul.f32 0.70710677, %v1973_v5  ;;  %v1042_v13 = vmul.f32 0.70710677, %v1977_v7 }
 0x179   :  { %v1539_v46 = vpop.eup %1538  ;;  %v1159_v29 = vadd.f32 1.0, %v1537_v10  ;;  %1286 = vst [vmem:[#allocation7 + $0xe0] sm:$0xff] %v1222_v15  ;;  %1552 = verf.f32 %v1039_v9  ;;  %v916_v25 = vadd.f32 %v1735_v41, %v1858_v8  ;;  %v973_v22 = vmul.f32 0.5, %v909_v18 }
 0x17a   :  { %v1954_v28 = vpop.f32.mrb[30].mxu0  ;;  %v1541_v21 = vpop.eup %1540  ;;  %v1161_v17 = vadd.f32 1.0, %v1539_v46  ;;  %1288 = vst [vmem:[#allocation7 + $0xf0] sm:$0xff] %v1224_v16  ;;  %1554 = verf.f32 %v1041_v49  ;;  %v974_v37 = vmul.f32 0.5, %v1951_v19  ;;  %v917_v60 = vadd.f32 %v1739_v45, %v1868_v30 }
 0x17b   :  { %v1958_v26 = vpop.f32.mrb[30].mxu1  ;;  %v1960_v54 = vpop.f32.mrb[31].mxu0  ;;  %v1223_v11 = vmul.f32 %v1159_v29, %v967_v44  ;;  %v1162_v48 = vadd.f32 1.0, %v1541_v21  ;;  %1556 = verf.f32 %v1042_v13  ;;  %v1044_v36 = vmul.f32 0.70710677, %v916_v25 }
 0x17c   :  { %v1963_v40 = vpop.f32.mrb[31].mxu1  ;;  %v1225_v31 = vmul.f32 %v1161_v17, %v969_v32  ;;  %v1543_v33 = vpop.eup %1542  ;;  %v1991_v50 = vadd.f32 %v1733_v39, %v1879_v3  ;;  %v1043_v58 = vmul.f32 0.70710677, %v915_v0  ;;  %v976_v19 = vmul.f32 0.5, %v912_v6 }
 0x17d   :  { %1287 = vst [vmem:[#allocation7 + $0xe8] sm:$0xff] %v1223_v11  ;;  %v1226_v35 = vmul.f32 %v1162_v48, %v970_v63  ;;  %v1545_v44 = vpop.eup %1544  ;;  %v1164_v12 = vadd.f32 1.0, %v1543_v33  ;;  %1558 = verf.f32 %v1044_v36  ;;  %v1045_v46 = vmul.f32 0.70710677, %v917_v60 }
 0x17e   :  { %1289 = vst [vmem:[#allocation7 + $0xf8] sm:$0xff] %v1225_v31  ;;  %v1547_v8 = vpop.eup %1546  ;;  %v1163_v47 = vadd.f32 1.0, %v1545_v44  ;;  %v975_v29 = vmul.f32 0.5, %v911_v27  ;;  %1560 = verf.f32 %v1043_v58  ;;  %v1046_v30 = vmul.f32 0.70710677, %v1991_v50 }
 0x17f   :  { %1290 = vst [vmem:[#allocation7 + $0x100] sm:$0xff] %v1226_v35  ;;  %v1549_v18 = vpop.eup %1548  ;;  %v1228_v20 = vmul.f32 %v1164_v12, %v972_v24  ;;  %v1165_v32 = vadd.f32 1.0, %v1547_v8  ;;  %1562 = verf.f32 %v1045_v46  ;;  %v920_v3 = vadd.f32 %v1735_v41, %v1882_v55 }
 0x180   :  { %v1227_v10 = vmul.f32 %v1163_v47, %v971_v14  ;;  %v1166_v15 = vadd.f32 1.0, %v1549_v18  ;;  %v1551_v16 = vpop.eup %1550  ;;  %1564 = verf.f32 %v1046_v30  ;;  %v919_v6 = vadd.f32 %v1737_v42, %v1884_v4 }
 0x181   :  { %1292 = vst [vmem:[#allocation7 + $0x110] sm:$0xff] %v1228_v20  ;;  %v1229_v23 = vmul.f32 %v1165_v32, %v973_v22  ;;  %v1168_v17 = vadd.f32 1.0, %v1551_v16  ;;  %v977_v27 = vmul.f32 0.5, %v1973_v5  ;;  %v1048_v9 = vmul.f32 0.70710677, %v920_v3 }
 0x182   :  { %1291 = vst [vmem:[#allocation7 + $0x108] sm:$0xff] %v1227_v10  ;;  %v1230_v21 = vmul.f32 %v1166_v15, %v974_v37  ;;  %v978_v14 = vmul.f32 0.5, %v1977_v7  ;;  %v1047_v49 = vmul.f32 0.70710677, %v919_v6  ;;  %v921_v31 = vadd.f32 %v1739_v45, %v1887_v62 }
 0x183   :  { %1293 = vst [vmem:[#allocation7 + $0x118] sm:$0xff] %v1229_v23  ;;  %v1553_v63 = vpop.eup %1552  ;;  %v1232_v24 = vmul.f32 %v1168_v17, %v976_v19  ;;  %1566 = verf.f32 %v1048_v9  ;;  %v2004_v4 = vadd.f32 %v1733_v39, %v1890_v59  ;;  %v2008_v5 = vadd.f32 %v1735_v41, %v1900_v51 }
 0x184   :  { %1294 = vst [vmem:[#allocation7 + $0x120] sm:$0xff] %v1230_v21  ;;  %v1555_v11 = vpop.eup %1554  ;;  %v1167_v48 = vadd.f32 1.0, %v1553_v63  ;;  %v980_v22 = vmul.f32 0.5, %v916_v25  ;;  %1568 = verf.f32 %v1047_v49  ;;  %v979_v44 = vmul.f32 0.5, %v915_v0 }
 0x185   :  { %v1557_v55 = vpop.eup %1556  ;;  %1296 = vst [vmem:[#allocation7 + $0x130] sm:$0xff] %v1232_v24  ;;  %v1169_v13 = vadd.f32 1.0, %v1555_v11  ;;  %v1049_v62 = vmul.f32 0.70710677, %v921_v31  ;;  %v1050_v12 = vmul.f32 0.70710677, %v2004_v4  ;;  %v923_v0 = vadd.f32 %v1737_v42, %v1902_v52 }
 0x186   :  { %v1231_v35 = vmul.f32 %v1167_v48, %v975_v29  ;;  %v1170_v33 = vadd.f32 1.0, %v1557_v55  ;;  %v981_v47 = vmul.f32 0.5, %v917_v60  ;;  %v1052_v59 = vmul.f32 0.70710677, %v2008_v5 }
 0x187   :  { %v1559_v7 = vpop.eup %1558  ;;  %v1233_v36 = vmul.f32 %v1169_v13, %v977_v27  ;;  %1570 = verf.f32 %v1049_v62  ;;  %v925_v32 = vadd.f32 %v1739_v45, %v1913_v2  ;;  %v982_v10 = vmul.f32 0.5, %v1991_v50 }
 0x188   :  { %1295 = vst [vmem:[#allocation7 + $0x128] sm:$0xff] %v1231_v35  ;;  %v1234_v37 = vmul.f32 %v1170_v33, %v978_v14  ;;  %v1172_v8 = vadd.f32 1.0, %v1559_v7  ;;  %v1561_v51 = vpop.eup %1560  ;;  %1572 = verf.f32 %v1050_v12  ;;  %v926_v15 = vadd.f32 %v1733_v39, %v1922_v34 }
 0x189   :  { %1297 = vst [vmem:[#allocation7 + $0x138] sm:$0xff] %v1233_v36  ;;  %v1563_v25 = vpop.eup %1562  ;;  %v1171_v20 = vadd.f32 1.0, %v1561_v51  ;;  %1574 = verf.f32 %v1052_v59  ;;  %v2021_v19 = vadd.f32 %v1735_v41, %v1924_v61  ;;  %v1051_v23 = vmul.f32 0.70710677, %v923_v0 }
 0x18a   :  { %1298 = vst [vmem:[#allocation7 + $0x140] sm:$0xff] %v1234_v37  ;;  %v1236_v18 = vmul.f32 %v1172_v8, %v980_v22  ;;  %v1565_v58 = vpop.eup %1564  ;;  %v1173_v60 = vadd.f32 1.0, %v1563_v25  ;;  %v2025_v52 = vadd.f32 %v1737_v42, %v1926_v38  ;;  %v984_v29 = vmul.f32 0.5, %v920_v3 }
 0x18b   :  { %v1235_v46 = vmul.f32 %v1171_v20, %v979_v44  ;;  %v1174_v16 = vadd.f32 1.0, %v1565_v58  ;;  %v1053_v30 = vmul.f32 0.70710677, %v925_v32  ;;  %v983_v17 = vmul.f32 0.5, %v919_v6 }
 0x18c   :  { %1300 = vst [vmem:[#allocation7 + $0x150] sm:$0xff] %v1236_v18  ;;  %v1237_v2 = vmul.f32 %v1173_v60, %v981_v47  ;;  %1576 = verf.f32 %v1051_v23  ;;  %v1054_v34 = vmul.f32 0.70710677, %v926_v15  ;;  %v985_v24 = vmul.f32 0.5, %v921_v31 }
 0x18d   :  { %v1567_v21 = vpop.eup %1566  ;;  %1299 = vst [vmem:[#allocation7 + $0x148] sm:$0xff] %v1235_v46  ;;  %v1238_v50 = vmul.f32 %v1174_v16, %v982_v10  ;;  %1578 = verf.f32 %v1053_v30  ;;  %v1056_v27 = vmul.f32 0.70710677, %v2021_v19  ;;  %v1055_v38 = vmul.f32 0.70710677, %v2025_v52 }
 0x18e   :  { %v1569_v63 = vpop.eup %1568  ;;  %1301 = vst [vmem:[#allocation7 + $0x158] sm:$0xff] %v1237_v2  ;;  %v1176_v61 = vadd.f32 1.0, %v1567_v21  ;;  %1580 = verf.f32 %v1054_v34  ;;  %v2031_v6 = vadd.f32 %v1739_v45, %v1930_v43  ;;  %v986_v31 = vmul.f32 0.5, %v2004_v4 }
 0x18f   :  { %1302 = vst [vmem:[#allocation7 + $0x160] sm:$0xff] %v1238_v50  ;;  %v1175_v9 = vadd.f32 1.0, %v1569_v63  ;;  %1582 = verf.f32 %v1056_v27  ;;  %v2036_v55 = vadd.f32 %v1733_v39, %v1935_v57  ;;  %v2040_v13 = vadd.f32 %v1735_v41, %v1937_v1 }
 0x190   :  { %v1240_v3 = vmul.f32 %v1176_v61, %v984_v29  ;;  %1584 = verf.f32 %v1055_v38  ;;  %v1057_v22 = vmul.f32 0.70710677, %v2031_v6  ;;  %v2045_v43 = vadd.f32 %v1737_v42, %v1939_v53 }
 0x191   :  { %v1571_v11 = vpop.eup %1570  ;;  %v1239_v48 = vmul.f32 %v1175_v9, %v983_v17  ;;  %v988_v4 = vmul.f32 0.5, %v2008_v5  ;;  %v1058_v57 = vmul.f32 0.70710677, %v2036_v55  ;;  %v987_v62 = vmul.f32 0.5, %v923_v0 }
 0x192   :  { %v1573_v14 = vpop.eup %1572  ;;  %1304 = vst [vmem:[#allocation7 + $0x170] sm:$0xff] %v1240_v3  ;;  %v1177_v49 = vadd.f32 1.0, %v1571_v11  ;;  %1586 = verf.f32 %v1057_v22  ;;  %v1060_v1 = vmul.f32 0.70710677, %v2040_v13  ;;  %v989_v37 = vmul.f32 0.5, %v925_v32 }
 0x193   :  { %v1575_v35 = vpop.eup %1574  ;;  %1303 = vst [vmem:[#allocation7 + $0x168] sm:$0xff] %v1239_v48  ;;  %v1178_v33 = vadd.f32 1.0, %v1573_v14  ;;  %1588 = verf.f32 %v1058_v57  ;;  %v1059_v8 = vmul.f32 0.70710677, %v2045_v43  ;;  %v933_v53 = vadd.f32 %v1739_v45, %v1945_v56 }
 0x194   :  { %v1241_v7 = vmul.f32 %v1177_v49, %v985_v24  ;;  %v1180_v36 = vadd.f32 1.0, %v1575_v35  ;;  %1590 = verf.f32 %v1060_v1  ;;  %v990_v51 = vmul.f32 0.5, %v926_v15 }
 0x195   :  { %v1242_v44 = vmul.f32 %v1178_v33, %v986_v31  ;;  %1592 = verf.f32 %v1059_v8  ;;  %v1061_v20 = vmul.f32 0.70710677, %v933_v53  ;;  %v934_v0 = vadd.f32 %v1733_v39, %v1954_v28 }
 0x196   :  { %1305 = vst [vmem:[#allocation7 + $0x178] sm:$0xff] %v1241_v7  ;;  %v1244_v12 = vmul.f32 %v1180_v36, %v988_v4  ;;  %v1577_v47 = vpop.eup %1576  ;;  %v936_v10 = vadd.f32 %v1735_v41, %v1958_v26  ;;  %v935_v56 = vadd.f32 %v1737_v42, %v1960_v54  ;;  %v992_v15 = vmul.f32 0.5, %v2021_v19 }
 0x197   :  { %1306 = vst [vmem:[#allocation7 + $0x180] sm:$0xff] %v1242_v44  ;;  %v1579_v5 = vpop.eup %1578  ;;  %v1179_v59 = vadd.f32 1.0, %v1577_v47  ;;  %1594 = verf.f32 %v1061_v20  ;;  %v991_v29 = vmul.f32 0.5, %v2025_v52  ;;  %v1062_v28 = vmul.f32 0.70710677, %v934_v0 }
 0x198   :  { %1308 = vst [vmem:[#allocation7 + $0x190] sm:$0xff] %v1244_v12  ;;  %v1581_v18 = vpop.eup %1580  ;;  %v1181_v25 = vadd.f32 1.0, %v1579_v5  ;;  %v1064_v21 = vmul.f32 0.70710677, %v936_v10  ;;  %v1063_v50 = vmul.f32 0.70710677, %v935_v56  ;;  %v937_v42 = vadd.f32 %v1739_v45, %v1963_v40 }
 0x199   :  { %v1583_v32 = vpop.eup %1582  ;;  %v1243_v58 = vmul.f32 %v1179_v59, %v987_v62  ;;  %v1182_v60 = vadd.f32 1.0, %v1581_v18  ;;  %1596 = verf.f32 %v1062_v28  ;;  %v993_v19 = vmul.f32 0.5, %v2031_v6 }
 0x19a   :  { %v1585_v46 = vpop.eup %1584  ;;  %v1245_v16 = vmul.f32 %v1181_v25, %v989_v37  ;;  %v1184_v23 = vadd.f32 1.0, %v1583_v32  ;;  %1598 = verf.f32 %v1064_v21  ;;  %v1065_v17 = vmul.f32 0.70710677, %v937_v42 }
 0x19b   :  { %1307 = vst [vmem:[#allocation7 + $0x188] sm:$0xff] %v1243_v58  ;;  %v1246_v2 = vmul.f32 %v1182_v60, %v990_v51  ;;  %v1183_v39 = vadd.f32 1.0, %v1585_v46  ;;  %1600 = verf.f32 %v1063_v50  ;;  %v994_v63 = vmul.f32 0.5, %v2036_v55 }
 0x19c   :  { %1309 = vst [vmem:[#allocation7 + $0x198] sm:$0xff] %v1245_v16  ;;  %v1248_v30 = vmul.f32 %v1184_v23, %v992_v15  ;;  %v1587_v26 = vpop.eup %1586  ;;  %v996_v9 = vmul.f32 0.5, %v2040_v13  ;;  %1602 = verf.f32 %v1065_v17  ;;  %v995_v40 = vmul.f32 0.5, %v2045_v43 }
 0x19d   :  { %1310 = vst [vmem:[#allocation7 + $0x1a0] sm:$0xff] %v1246_v2  ;;  %v1247_v41 = vmul.f32 %v1183_v39, %v991_v29  ;;  %v1589_v54 = vpop.eup %1588  ;;  %v1185_v52 = vadd.f32 1.0, %v1587_v26  ;;  %v997_v14 = vmul.f32 0.5, %v933_v53  ;;  %v998_v33 = vmul.f32 0.5, %v934_v0 }
 0x19e   :  { %1312 = vst [vmem:[#allocation7 + $0x1b0] sm:$0xff] %v1248_v30  ;;  %v1591_v34 = vpop.eup %1590  ;;  %v1186_v61 = vadd.f32 1.0, %v1589_v54  ;;  %v1000_v7 = vmul.f32 0.5, %v936_v10  ;;  %v999_v36 = vmul.f32 0.5, %v935_v56  ;;  %v1001_v12 = vmul.f32 0.5, %v937_v42 }
 0x19f   :  { %1311 = vst [vmem:[#allocation7 + $0x1a8] sm:$0xff] %v1247_v41  ;;  %v1593_v24 = vpop.eup %1592  ;;  %v1249_v27 = vmul.f32 %v1185_v52, %v993_v19  ;;  %v1188_v38 = vadd.f32 1.0, %v1591_v34 }
 0x1a0   :  { %v1250_v45 = vmul.f32 %v1186_v61, %v994_v63  ;;  %v1187_v3 = vadd.f32 1.0, %v1593_v24 }
 0x1a1   :  { %1313 = vst [vmem:[#allocation7 + $0x1b8] sm:$0xff] %v1249_v27  ;;  %v1252_v11 = vmul.f32 %v1188_v38, %v996_v9  ;;  %v1595_v48 = vpop.eup %1594 }
 0x1a2   :  { %1314 = vst [vmem:[#allocation7 + $0x1c0] sm:$0xff] %v1250_v45  ;;  %v1251_v6 = vmul.f32 %v1187_v3, %v995_v40  ;;  %v1189_v49 = vadd.f32 1.0, %v1595_v48 }
 0x1a3   :  { %1316 = vst [vmem:[#allocation7 + $0x1d0] sm:$0xff] %v1252_v11  ;;  %v1597_v31 = vpop.eup %1596 }
 0x1a4   :  { %1315 = vst [vmem:[#allocation7 + $0x1c8] sm:$0xff] %v1251_v6  ;;  %v1253_v55 = vmul.f32 %v1189_v49, %v997_v14  ;;  %v1599_v35 = vpop.eup %1598  ;;  %v1190_v13 = vadd.f32 1.0, %v1597_v31 }
 0x1a5   :  { %v1601_v22 = vpop.eup %1600  ;;  %v1192_v4 = vadd.f32 1.0, %v1599_v35 }
 0x1a6   :  { %1317 = vst [vmem:[#allocation7 + $0x1d8] sm:$0xff] %v1253_v55  ;;  %v1254_v43 = vmul.f32 %v1190_v13, %v998_v33  ;;  %v1191_v57 = vadd.f32 1.0, %v1601_v22  ;;  %v1603_v44 = vpop.eup %1602 }
 0x1a7   :  { %v1256_v62 = vmul.f32 %v1192_v4, %v1000_v7  ;;  %v1193_v37 = vadd.f32 1.0, %v1603_v44 }
 0x1a8   :  { %1318 = vst [vmem:[#allocation7 + $0x1e0] sm:$0xff] %v1254_v43  ;;  %v1255_v1 = vmul.f32 %v1191_v57, %v999_v36 }
 0x1a9   :  { %1320 = vst [vmem:[#allocation7 + $0x1f0] sm:$0xff] %v1256_v62  ;;  %v1257_v8 = vmul.f32 %v1193_v37, %v1001_v12 }
 0x1aa   :  { %1319 = vst [vmem:[#allocation7 + $0x1e8] sm:$0xff] %v1255_v1 }
 0x1ab   :  { %1321 = vst [vmem:[#allocation7 + $0x1f8] sm:$0xff] %v1257_v8 }
 0x1ac   :  { %1659 = shalt.err (!%p1656_p6)
}
 0x1ad   :  { %s1660_s17 = scalar_lea.hbm %s2085_s3, 8192 }
 0x1ae   :  { %p1661_p7 = scmp.ne.s32.totalorder %s2085_s3, %s1660_s17  ;;  %p1664_p8 = scmp.lt.u32.totalorder %s1660_s17, %s2085_s3 }
 0x1b0   :  { %p1666_p9 = pnand %p1664_p8, %p1661_p7 }
 0x1b2   :  { %1669 = shalt.err (!%p1666_p9)
}
 0x1b3   :  { %1333 = dma.vmem_to_hbm [thread:$0]  %s1328_s13, 8192, %s2085_s3, [#allocation4], %s1680_s0, %s1680_s0, %s1681_s9  }
 0x1b4   :  { %1674 = dma.done.wait [#allocation4], 8192  }
 0x1b5   :  { %1675 = vsyncadd [#allocation4], 4294959104 }
 0x1b6   :  { %1337 = vsyncpa [#allocation3], 1 }
 0x1b7   :  { %1338 = vsyncpa [#allocation6], 1 }
 0x1b8   :  { %1339 = vsyncpa [#allocation4], 1 }

</bundles_post_ra>
